<compile_context>
chip_gen: v6e
topology: v6e:2x2x1
jax: 0.10.0
libtpu: 0.0.40
codegen_flags: <defaults>
</compile_context>

<pallas_src>
import math

import jax
import jax.numpy as jnp
from jax import lax
from jax.experimental import pallas as pl
from jax.experimental.pallas import tpu as pltpu

C = 128      # channel dim fixed by the module (Conv1d(128, 128, 1))
LANE = 128   # TPU lane width


def _round_up(x, m):
    return (x + m - 1) // m * m


def _cdiv(a, b):
    return (a + b - 1) // b


def _default_vmem_limit():
    # v5e/v6e: 128 MiB physical -> ~112 MiB scoped; v7x: 64 MiB -> ~48 MiB.
    try:
        cap = int(pltpu.get_tpu_info().vmem_capacity_bytes)
        return max(cap - (16 << 20), 32 << 20)
    except Exception:
        return 48 << 20   # conservative: fits every chip (incl. v7x)


def _softmax_attend(up, lhs, v, out_ref, m, mxu_dtype, approx_reciprocal):
    """Per-(batch, N-tile) hot path.

    up:  (C, tN)      mxu_dtype
    lhs: (M + C, C)   mxu_dtype  -- rows [0:M] = (Wqk @ down)^T, rows [M:] = Ws
    v:   (C, M)       mxu_dtype
    """
    # One fused MXU matmul yields the scaled energy AND the skip link,
    # both already (·, tN) lane-dense.
    es = jnp.dot(lhs, up, preferred_element_type=jnp.float32)       # (M+C, tN)
    e = es[:m, :]                                                   # (M, tN)
    skip = es[m:, :]                                                # (C, tN)

    # Softmax over M (axis 0), f32 numerics.  Normalisation is applied AFTER
    # the v @ p matmul: C*tN multiplies instead of M*tN (identical result,
    # positive per-column scale).
    e = e - jnp.max(e, axis=0, keepdims=True)
    p = jnp.exp(e)
    denom = jnp.sum(p, axis=0, keepdims=True)                        # (1, tN)

    x = jnp.dot(v, p.astype(mxu_dtype),
                preferred_element_type=jnp.float32)                  # (C, tN)

    if approx_reciprocal:
        inv = pl.reciprocal(denom, approx=True)   # EUP slot; ~1e-3 rel error
    else:
        inv = 1.0 / denom
    out_ref[0] = (skip + x * inv).astype(out_ref.dtype)


def _make_fused_kernel(m, mxu_dtype, approx_reciprocal):
    """Scratch variant: down-cloud projections computed once per batch."""
    def kernel(up_ref, down_ref, wqk_ref, wv_ref, ws_ref, out_ref,
               lhs_ref, v_ref):
        # Once per batch: fill the combined LHS and V scratch.  Correct only
        # while the N-tile grid axis stays "arbitrary" (sequential per batch).
        @pl.when(pl.program_id(1) == 0)
        def _():
            down = down_ref[0]                                       # (C, M)
            # (Wqk @ down)^T via a transposed-lhs contraction -> no per-batch
            # (C, M) -> (M, C) XLU transpose pass.
            kqt = lax.dot_general(down, wqk_ref[...],
                                  (((0,), (1,)), ((), ())),
                                  preferred_element_type=jnp.float32)  # (M, C)
            lhs_ref[:m, :] = kqt.astype(mxu_dtype)
            lhs_ref[m:, :] = ws_ref[...]
            v_ref[...] = jnp.dot(wv_ref[...], down,
                                 preferred_element_type=jnp.float32
                                 ).astype(mxu_dtype)                   # (C, M)

        _softmax_attend(up_ref[0], lhs_ref[...], v_ref[...], out_ref,
                        m, mxu_dtype, approx_reciprocal)

    return kernel


def _make_hoisted_kernel(m, mxu_dtype, approx_reciprocal):
    """Hoisted variant: projections precomputed in XLA, no scratch/no pl.when."""
    def kernel(up_ref, lhs_ref, v_ref, out_ref):
        _softmax_attend(up_ref[0], lhs_ref[0], v_ref[0], out_ref,
                        m, mxu_dtype, approx_reciprocal)

    return kernel


def upsample(pcd_up, pcd_down, wq, wk, wv, ws, *,
             tile_n=512,
             mxu_dtype=jnp.bfloat16,
             out_dtype=None,
             hoist_down_proj=False,
             approx_reciprocal=True,
             vmem_limit_bytes=None):
    """Fused UpSample forward.

    pcd_up: (B, 128, N), pcd_down: (B, 128, M), weights: (128, 128).
    mxu_dtype: MXU operand dtype (accumulation is always f32).  bf16 is the
      recommended fast path on v5e/v6e/v7x; note the skip link Ws @ up is then
      also computed from bf16 `up` (pass jnp.float32 for strict parity).
    hoist_down_proj: precompute the per-batch down projections in plain XLA
      (removes scratch + the n==0 bubble and makes both grid axes "parallel";
      recommended on v7x when B is small).
    """
    B, Cc, N = pcd_up.shape
    Bd, Cd, M = pcd_down.shape
    assert Cc == C and Cd == C and Bd == B
    assert tile_n % LANE == 0 and tile_n > 0

    if out_dtype is None:
        out_dtype = pcd_up.dtype
    if vmem_limit_bytes is None:
        vmem_limit_bytes = _default_vmem_limit()

    # Fold the q/k projections and the 1/sqrt(C) softmax scale into one matrix.
    wqk = (jnp.dot(wq.T, wk) / math.sqrt(float(C))).astype(mxu_dtype)
    wv_c = wv.astype(mxu_dtype)
    ws_c = ws.astype(mxu_dtype)

    # Wrapper-side cast: on the bf16 path this halves the streamed HBM bytes
    # of the (mem-bound) up/down reads and halves the up/out VMEM blocks.
    up_c = pcd_up.astype(mxu_dtype)
    down_c = pcd_down.astype(mxu_dtype)

    # N-tile selection: even, lane-dense tiles with minimal padding waste
    # (avoid a last tile that is mostly zeros).  Padded columns hold garbage
    # (uniform-softmax mean of v) and are sliced off at the end.
    n_min = _round_up(N, LANE)
    tn_max = min(tile_n, n_min)
    num_tiles = _cdiv(n_min, tn_max)
    tn = _round_up(_cdiv(n_min, num_tiles), LANE)
    n_pad = tn * num_tiles
    if n_pad != N:
        up_c = jnp.pad(up_c, ((0, 0), (0, 0), (0, n_pad - N)))

    out_shape = jax.ShapeDtypeStruct((B, C, n_pad), out_dtype)
    up_spec = pl.BlockSpec((1, C, tn), lambda b, n: (b, 0, n))
    out_spec = pl.BlockSpec((1, C, tn), lambda b, n: (b, 0, n))

    if hoist_down_proj:
        # Per-batch projections in plain XLA (still MXU work, just outside the
        # kernel).  Both grid axes become "parallel" -> good dual-TensorCore
        # utilisation on v7x even for B == 1, and no scratch VMEM.
        kqt = jnp.einsum('ci,bim->bmc', wqk, down_c,
                         preferred_element_type=jnp.float32).astype(mxu_dtype)
        v_pre = jnp.einsum('ci,bim->bcm', wv_c, down_c,
                           preferred_element_type=jnp.float32).astype(mxu_dtype)
        ws_rows = jnp.broadcast_to(ws_c[None], (B, C, C))
        lhs = jnp.concatenate([kqt, ws_rows], axis=1)          # (B, M+C, C)

        out = pl.pallas_call(
            _make_hoisted_kernel(M, mxu_dtype, approx_reciprocal),
            out_shape=out_shape,
            grid_spec=pltpu.PrefetchScalarGridSpec(
                num_scalar_prefetch=0,
                grid=(B, num_tiles),
                in_specs=[
                    up_spec,                                            # up tile
                    pl.BlockSpec((1, M + C, C), lambda b, n: (b, 0, 0)),  # lhs
                    pl.BlockSpec((1, C, M), lambda b, n: (b, 0, 0)),      # v
                ],
                out_specs=out_spec,
            ),
            compiler_params=pltpu.CompilerParams(
                dimension_semantics=("parallel", "parallel"),
                vmem_limit_bytes=vmem_limit_bytes,
            ),
        )(up_c, lhs, v_pre)
    else:
        out = pl.pallas_call(
            _make_fused_kernel(M, mxu_dtype, approx_reciprocal),
            out_shape=out_shape,
            grid_spec=pltpu.PrefetchScalarGridSpec(
                num_scalar_prefetch=0,
                grid=(B, num_tiles),
                in_specs=[
                    up_spec,                                           # up tile
                    pl.BlockSpec((1, C, M), lambda b, n: (b, 0, 0)),   # down
                    pl.BlockSpec((C, C), lambda b, n: (0, 0)),         # Wqk
                    pl.BlockSpec((C, C), lambda b, n: (0, 0)),         # Wv
                    pl.BlockSpec((C, C), lambda b, n: (0, 0)),         # Ws
                ],
                out_specs=out_spec,
                scratch_shapes=[
                    pltpu.VMEM((M + C, C), mxu_dtype),  # [(Wqk@down)^T ; Ws]
                    pltpu.VMEM((C, M), mxu_dtype),      # Wv @ down
                ],
            ),
            compiler_params=pltpu.CompilerParams(
                # Batch axis shards across TensorCores; N-tile axis must stay
                # "arbitrary" because it reuses the per-batch scratch.
                dimension_semantics=("parallel", "arbitrary"),
                vmem_limit_bytes=vmem_limit_bytes,
            ),
        )(up_c, down_c, wqk, wv_c, ws_c)

    return out[:, :, :N] if n_pad != N else out


def upsample_ref(pcd_up, pcd_down, wq, wk, wv, ws):
    """Pure-JAX reference mirroring the PyTorch forward."""
    q = jnp.einsum('oi,bin->bon', wq, pcd_up)
    k = jnp.einsum('oi,bim->bom', wk, pcd_down)
    v = jnp.einsum('oi,bim->bom', wv, pcd_down)
    energy = jnp.einsum('bcn,bcm->bnm', q, k)
    attn = jax.nn.softmax(energy / math.sqrt(q.shape[-2]), axis=-1)
    x = jnp.einsum('bnm,bcm->bcn', attn, v)
    return jnp.einsum('oi,bin->bon', ws, pcd_up) + x


if __name__ == "__main__":
    key = jax.random.PRNGKey(0)
    k_up, k_down, k_wq, k_wk, k_wv, k_ws = jax.random.split(key, 6)

    # Small shapes; channels are fixed at 128 by the module.  N is deliberately
    # not a multiple of the tile to exercise padding + a multi-tile grid.
    B, N, M = 2, 300, 128
    pcd_up = jax.random.normal(k_up, (B, C, N), dtype=jnp.float32)
    pcd_down = jax.random.normal(k_down, (B, C, M), dtype=jnp.float32)

    # Conv1d(128, 128, 1, bias=False) weights -> (128, 128)
    bound = 1.0 / math.sqrt(C)
    wq = jax.random.uniform(k_wq, (C, C), jnp.float32, -bound, bound)
    wk = jax.random.uniform(k_wk, (C, C), jnp.float32, -bound, bound)
    wv = jax.random.uniform(k_wv, (C, C), jnp.float32, -bound, bound)
    ws = jax.random.uniform(k_ws, (C, C), jnp.float32, -bound, bound)

    ref = upsample_ref(pcd_up, pcd_down, wq, wk, wv, ws)

    # f32 MXU operands: strict check (covers Wqk fold, skip fusion,
    # post-normalisation and the approx reciprocal).  bf16 operands are the
    # recommended fast path on real TPU hardware (mxu_dtype=jnp.bfloat16) but
    # are not exercised here: the interpret harness lacks bf16 dot support.
    out = jax.block_until_ready(
        upsample(pcd_up, pcd_down, wq, wk, wv, ws,
                 tile_n=128, mxu_dtype=jnp.float32))
    assert out.shape == (B, C, N)
    assert jnp.allclose(out, ref, atol=2e-3, rtol=2e-3), \
        float(jnp.max(jnp.abs(out - ref)))

    # Hoisted-projection variant (v7x / small-batch path), also f32.
    out_h = jax.block_until_ready(
        upsample(pcd_up, pcd_down, wq, wk, wv, ws,
                 tile_n=128, mxu_dtype=jnp.float32, hoist_down_proj=True))
    assert out_h.shape == (B, C, N)
    assert jnp.allclose(out_h, ref, atol=2e-3, rtol=2e-3), \
        float(jnp.max(jnp.abs(out_h - ref)))

    print("KERNEL_OK")
</pallas_src>

<mosaic_0001>
module attributes {stable_mosaic.version = 11 : i64} {
  func.func @kernel(%arg0: i32, %arg1: i32, %arg2: memref<1x128x128xf32, #tpu.memory_space<vmem>>, %arg3: memref<1x128x128xf32, #tpu.memory_space<vmem>>, %arg4: memref<128x128xf32, #tpu.memory_space<vmem>>, %arg5: memref<128x128xf32, #tpu.memory_space<vmem>>, %arg6: memref<128x128xf32, #tpu.memory_space<vmem>>, %arg7: memref<1x128x128xf32, #tpu.memory_space<vmem>>, %arg8: memref<256x128xf32, #tpu.memory_space<vmem>>, %arg9: memref<128x128xf32, #tpu.memory_space<vmem>>) attributes {dimension_semantics = [#tpu.dimension_semantics<parallel>, #tpu.dimension_semantics<arbitrary>], iteration_bounds = array<i64: 2, 3>, scalar_prefetch = 0 : i64, scratch_operands = 2 : i64, tpu.core_type = #tpu.core_type<tc>, window_params = [{transform_indices = @transform_0, window_bounds = array<i64: 1, 128, 128>}, {transform_indices = @transform_1, window_bounds = array<i64: 1, 128, 128>}, {pipeline_mode = #tpu.pipeline_mode<synchronous>, transform_indices = @transform_2, window_bounds = array<i64: 128, 128>}, {pipeline_mode = #tpu.pipeline_mode<synchronous>, transform_indices = @transform_3, window_bounds = array<i64: 128, 128>}, {pipeline_mode = #tpu.pipeline_mode<synchronous>, transform_indices = @transform_4, window_bounds = array<i64: 128, 128>}, {transform_indices = @transform_5, window_bounds = array<i64: 1, 128, 128>}]} {
    %c0_i32 = arith.constant 0 : i32
    %0 = arith.cmpi eq, %arg1, %c0_i32 : i32
    %1 = arith.extui %0 : i1 to i32
    %c0_i32_0 = arith.constant 0 : i32
    %2 = arith.cmpi ne, %1, %c0_i32_0 : i32
    scf.if %2 {
      %c0_13 = arith.constant 0 : index
      %c0_14 = arith.constant 0 : index
      %c0_15 = arith.constant 0 : index
      %25 = vector.load %arg3[%c0_13, %c0_14, %c0_15] : memref<1x128x128xf32, #tpu.memory_space<vmem>>, vector<1x128x128xf32>
      %26 = vector.shape_cast %25 : vector<1x128x128xf32> to vector<128x128xf32>
      %c0_16 = arith.constant 0 : index
      %c0_17 = arith.constant 0 : index
      %27 = vector.load %arg4[%c0_16, %c0_17] : memref<128x128xf32, #tpu.memory_space<vmem>>, vector<128x128xf32>
      %cst_18 = arith.constant dense<0.000000e+00> : vector<128x128xf32>
      %28 = tpu.matmul %26, %27, %cst_18 {dimension_numbers = #tpu.dot_dimension_numbers<[0], [1], [1], [0], [0, 1, 1, 0], [], []>} : vector<128x128xf32>, vector<128x128xf32>, vector<128x128xf32> -> vector<128x128xf32>
      %c0_19 = arith.constant 0 : index
      %c0_20 = arith.constant 0 : index
      %29 = vector.load %arg8[%c0_19, %c0_20] : memref<256x128xf32, #tpu.memory_space<vmem>>, vector<128x128xf32>
      tpu.vector_store %arg8[%c0_19, %c0_20], %28 {strides = array<i32>} : memref<256x128xf32, #tpu.memory_space<vmem>>, vector<128x128xf32>,
      %c0_21 = arith.constant 0 : index
      %c0_22 = arith.constant 0 : index
      %30 = vector.load %arg6[%c0_21, %c0_22] : memref<128x128xf32, #tpu.memory_space<vmem>>, vector<128x128xf32>
      %c128 = arith.constant 128 : index
      %c0_23 = arith.constant 0 : index
      %31 = vector.load %arg8[%c128, %c0_23] : memref<256x128xf32, #tpu.memory_space<vmem>>, vector<128x128xf32>
      tpu.vector_store %arg8[%c128, %c0_23], %30 {strides = array<i32>} : memref<256x128xf32, #tpu.memory_space<vmem>>, vector<128x128xf32>,
      %c0_24 = arith.constant 0 : index
      %c0_25 = arith.constant 0 : index
      %32 = vector.load %arg5[%c0_24, %c0_25] : memref<128x128xf32, #tpu.memory_space<vmem>>, vector<128x128xf32>
      %cst_26 = arith.constant dense<0.000000e+00> : vector<128x128xf32>
      %33 = tpu.matmul %32, %26, %cst_26 {dimension_numbers = #tpu.dot_dimension_numbers<[1], [0], [0], [1], [0, 0, 1, 1], [], []>} : vector<128x128xf32>, vector<128x128xf32>, vector<128x128xf32> -> vector<128x128xf32>
      %c0_27 = arith.constant 0 : index
      %c0_28 = arith.constant 0 : index
      %34 = vector.load %arg9[%c0_27, %c0_28] : memref<128x128xf32, #tpu.memory_space<vmem>>, vector<128x128xf32>
      tpu.vector_store %arg9[%c0_27, %c0_28], %33 {strides = array<i32>} : memref<128x128xf32, #tpu.memory_space<vmem>>, vector<128x128xf32>,
    } else {
    }
    %c0 = arith.constant 0 : index
    %c0_1 = arith.constant 0 : index
    %c0_2 = arith.constant 0 : index
    %3 = vector.load %arg2[%c0, %c0_1, %c0_2] : memref<1x128x128xf32, #tpu.memory_space<vmem>>, vector<1x128x128xf32>
    %4 = vector.shape_cast %3 : vector<1x128x128xf32> to vector<128x128xf32>
    %c0_3 = arith.constant 0 : index
    %c0_4 = arith.constant 0 : index
    %5 = vector.load %arg8[%c0_3, %c0_4] : memref<256x128xf32, #tpu.memory_space<vmem>>, vector<256x128xf32>
    %c0_5 = arith.constant 0 : index
    %c0_6 = arith.constant 0 : index
    %6 = vector.load %arg9[%c0_5, %c0_6] : memref<128x128xf32, #tpu.memory_space<vmem>>, vector<128x128xf32>
    %cst = arith.constant dense<0.000000e+00> : vector<256x128xf32>
    %7 = tpu.matmul %5, %4, %cst {dimension_numbers = #tpu.dot_dimension_numbers<[1], [0], [0], [1], [0, 0, 1, 1], [], []>} : vector<256x128xf32>, vector<128x128xf32>, vector<256x128xf32> -> vector<256x128xf32>
    %8 = vector.extract_strided_slice %7 {offsets = [0, 0], sizes = [128, 128], strides = [1, 1]} : vector<256x128xf32> to vector<128x128xf32>
    %9 = vector.extract_strided_slice %7 {offsets = [128, 0], sizes = [128, 128], strides = [1, 1]} : vector<256x128xf32> to vector<128x128xf32>
    %cst_7 = arith.constant dense<0xFF800000> : vector<128xf32>
    %10 = vector.multi_reduction <maximumf>, %8, %cst_7 [0] : vector<128x128xf32> to vector<128xf32>
    %11 = vector.shape_cast %10 : vector<128xf32> to vector<1x128xf32>
    %12 = vector.broadcast %11 : vector<1x128xf32> to vector<128x128xf32>
    %13 = arith.subf %8, %12 : vector<128x128xf32>
    %14 = math.exp %13 : vector<128x128xf32>
    %cst_8 = arith.constant dense<0.000000e+00> : vector<128xf32>
    %15 = vector.multi_reduction <add>, %14, %cst_8 [0] : vector<128x128xf32> to vector<128xf32>
    %16 = vector.shape_cast %15 : vector<128xf32> to vector<1x128xf32>
    %cst_9 = arith.constant dense<0.000000e+00> : vector<128x128xf32>
    %17 = tpu.matmul %6, %14, %cst_9 {dimension_numbers = #tpu.dot_dimension_numbers<[1], [0], [0], [1], [0, 0, 1, 1], [], []>} : vector<128x128xf32>, vector<128x128xf32>, vector<128x128xf32> -> vector<128x128xf32>
    %18 = tpu.reciprocal %16 {approx = true} : vector<1x128xf32> -> vector<1x128xf32>
    %19 = vector.broadcast %18 : vector<1x128xf32> to vector<128x128xf32>
    %20 = arith.mulf %17, %19 : vector<128x128xf32>
    %21 = arith.addf %9, %20 : vector<128x128xf32>
    %c0_10 = arith.constant 0 : index
    %c0_11 = arith.constant 0 : index
    %c0_12 = arith.constant 0 : index
    %22 = vector.load %arg7[%c0_10, %c0_11, %c0_12] : memref<1x128x128xf32, #tpu.memory_space<vmem>>, vector<1x128x128xf32>
    %23 = vector.shape_cast %22 : vector<1x128x128xf32> to vector<128x128xf32>
    %24 = vector.shape_cast %21 : vector<128x128xf32> to vector<1x128x128xf32>
    tpu.vector_store %arg7[%c0_10, %c0_11, %c0_12], %24 {strides = array<i32>} : memref<1x128x128xf32, #tpu.memory_space<vmem>>, vector<1x128x128xf32>,
    return
  }
  func.func @transform_0(%arg0: i32, %arg1: i32) -> (i32, i32, i32) {
    %c0_i32 = arith.constant 0 : i32
    %c0_i32_0 = arith.constant 0 : i32
    return %arg0, %c0_i32, %arg1 : i32, i32, i32
  }
  func.func @transform_1(%arg0: i32, %arg1: i32) -> (i32, i32, i32) {
    %c0_i32 = arith.constant 0 : i32
    %c0_i32_0 = arith.constant 0 : i32
    %c0_i32_1 = arith.constant 0 : i32
    return %arg0, %c0_i32, %c0_i32_0 : i32, i32, i32
  }
  func.func @transform_2(%arg0: i32, %arg1: i32) -> (i32, i32) {
    %c0_i32 = arith.constant 0 : i32
    %c0_i32_0 = arith.constant 0 : i32
    %c0_i32_1 = arith.constant 0 : i32
    return %c0_i32, %c0_i32_0 : i32, i32
  }
  func.func @transform_3(%arg0: i32, %arg1: i32) -> (i32, i32) {
    %c0_i32 = arith.constant 0 : i32
    %c0_i32_0 = arith.constant 0 : i32
    %c0_i32_1 = arith.constant 0 : i32
    return %c0_i32, %c0_i32_0 : i32, i32
  }
  func.func @transform_4(%arg0: i32, %arg1: i32) -> (i32, i32) {
    %c0_i32 = arith.constant 0 : i32
    %c0_i32_0 = arith.constant 0 : i32
    %c0_i32_1 = arith.constant 0 : i32
    return %c0_i32, %c0_i32_0 : i32, i32
  }
  func.func @transform_5(%arg0: i32, %arg1: i32) -> (i32, i32, i32) {
    %c0_i32 = arith.constant 0 : i32
    %c0_i32_0 = arith.constant 0 : i32
    return %arg0, %c0_i32, %arg1 : i32, i32, i32
  }
}

</mosaic_0001>

<bundles_post_ra>
// kernel: tpu_custom_call.1
= control target key start
LH: loop header
LB: loop body
LE: loop exit
PB: predicated region body
PF: predicated region fallthrough
CT: control target
= control target key end

     0   :  { %s2892_s0 = inlined_call_operand.hbm [shape: f32[2,128,384], index: 0, kind: input, shape index: {}]   ;;  %s2893_s1 = inlined_call_operand.hbm [shape: f32[2,128,128], index: 1, kind: input, shape index: {}]   ;;  %s2894_s2 = inlined_call_operand.hbm [shape: f32[128,128], index: 2, kind: input, shape index: {}]   ;;  %s2895_s3 = inlined_call_operand.hbm [shape: f32[128,128], index: 3, kind: input, shape index: {}]   ;;  %s2896_s4 = inlined_call_operand.hbm [shape: f32[128,128], index: 4, kind: input, shape index: {}]   ;;  %s2897_s5 = inlined_call_operand.hbm [shape: f32[2,128,384], index: 5, kind: output, shape index: {}]  }
   0x1   :  { %2911 = sst [smem:[#allocation25_spill]] %s2894_s2 }
   0x2   :  { %2912 = sst [smem:[#allocation26_spill]] %s2895_s3 }
   0x3   :  { %2913 = sst [smem:[#allocation27_spill]] %s2896_s4 }
   0x4   :  { %2914 = sst [smem:[#allocation28_spill]] %s2897_s5 }
   0x5   :  { %10 = vsyncpa [#allocation5], 0 }
   0x6   :  { %12 = vsyncpa [#allocation5 + $0x1], 0 }
   0x7   :  { %13 = vsyncpa [#allocation8], 0 }
   0x8   :  { %15 = vsyncpa [#allocation8 + $0x1], 0 }
   0x9   :  { %16 = vsyncpa [#allocation11], 0 }
   0xa   :  { %17 = vsyncpa [#allocation6], 0 }
   0xb   :  { %19 = vsyncpa [#allocation6 + $0x1], 0  ;;  %s2415_s18 = smov 0   ;;  %s2417_s19 = smov 0  }
   0xc   :  { %s2419_s20 = smov 0   ;;  %s2421_s21 = smov 0  }
   0xd   :  { %s2423_s22 = smov 0   ;;  %s2425_s23 = smov 0  }
   0xe   :  { %s2427_s24 = smov 0   ;;  %s2429_s25 = smov 0  }
   0xf   :  { %s2431_s26 = smov 0   ;;  %s2433_s27 = smov 0  }
  0x10   :  { %s2435_s28 = smov 0  }
  0x11 LB: > { %2915 = sst [smem:[#allocation19_spill]] %s2343_s21  ;;  %s2469_s29 = sadd.s32 4294967295, %s2371_s28   ;;  %s2371_s28 = sphi %s2435_s28, %s25_s28   ;;  %s2367_s27 = sphi %s2433_s27, %s2960_s27   ;;  %s2363_s26 = sphi %s2431_s26, %s2959_s26   ;;  %s2359_s25 = sphi %s2429_s25, %s2958_s25   ;;  %s2355_s24 = sphi %s2427_s24, %s2957_s24   ;;  %s2351_s23 = sphi %s2425_s23, %s2956_s23   ;;  %s2347_s22 = sphi %s2423_s22, %s2955_s22   ;;  %s2343_s21 = sphi %s2421_s21, %s2954_s21   ;;  %s2339_s20 = sphi %s2419_s20, %s2953_s20   ;;  %s2335_s19 = sphi %s2417_s19, %s2952_s19   ;;  %s2331_s18 = sphi %s2415_s18, %s2951_s18  }
  0x12   : > { %2916 = sst [smem:[#allocation20_spill]] %s2359_s25  ;;  %s1509_s30 = sadd.s32 4294967294, %s2371_s28  }
  0x13   : > { %p59_p0 = scmp.ne.s32.totalorder %s2347_s22, %s2343_s21  ;;  %p2898_p1 = scmp.eq.s32.totalorder %s2469_s29, 0 }
  0x14   : > { %p85_p2 = scmp.ne.s32.totalorder %s2335_s19, %s2331_s18  ;;  %p180_p5 = scmp.eq.s32.totalorder %s1509_s30, 5 }
  0x15   : > { %p2479_p4 = por %p2898_p1, %p59_p0  ;;  %p1510_p7 = scmp.ge.s32.totalorder %s2371_s28, 1 }
  0x16   : > { %p2485_p6 = por %p85_p2, %p2898_p1  ;;  %p2490_p8 = por %p180_p5, %p59_p0 }
  0x17   : > { %p187_p9 = scmp.lt.s32.totalorder %s2371_s28, 7  ;;  %s2373_s10 = smov [#allocation9]  }
  0x18   : > { %s2919_s8 = scalar_select %p2490_p8, 1, 0 }
  0x19   : > { %p2495_p10 = pnand %p1510_p7, %p187_p9  ;;  %s199_s11 = sshll.u32 %s2373_s10, 4  ;;  %s200_s11 = int_to_ptr.vmem [resolvable:$true] %s199_s11 }
  0x1a   : > { %2920 = sst [smem:[#allocation21_spill]] %s2919_s8  ;;  %s2374_s13 = smov [#allocation10]  }
  0x1b   : > { %p1945_p11 = pneg %p2495_p10  ;;  %s212_s14 = sshll.u32 %s2374_s13, 4  ;;  %s213_s14 = int_to_ptr.vmem [resolvable:$true] %s212_s14 }
  0x1c   : > { %s2375_s15 = smov [#allocation12]   ;;  %s2116_s17 = scalar_lea.vmem %s200_s11, 2048 }
  0x1d   : > { %p2503_p12 = pnand %p1945_p11, %p2898_p1  ;;  %s225_s16 = sshll.u32 %s2375_s15, 4  ;;  %s226_s16 = int_to_ptr.vmem [resolvable:$true] %s225_s16 }
  0x1e   : > { %p2117_p0 = scmp.ne.s32.totalorder %s200_s11, %s2116_s17  ;;  %p2124_p7 = scmp.lt.s32.totalorder %s200_s11, %s200_s11 }
  0x1f   : > { %p2107_p13 = pneg %p2503_p12  ;;  %p2125_p9 = scmp.lt.s32.totalorder %s2116_s17, %s2116_s17 }
  0x21   : > { %p2119_p2 = pnand %p2117_p0, %p2107_p13  ;;  %p2126_p11 = por %p2125_p9, %p2124_p7 }
  0x23   : > { %p2120_p5 = pneg %p2119_p2 }
  0x25   : > { %p2127_p1 = pnand %p2126_p11, %p2120_p5 }
  0x27   : > { %2130 = shalt.err (!%p2127_p1)
}
  0x28   : > { %s2900_s18 = smov 128   ;;  %s2902_s30 = smov 8  }
  0x29   : > { %s2923_s2 = sld [smem:[#allocation25_spill]]  ;;  %s2142_s15 = scalar_lea.vmem %s213_s14, 2048 }
  0x2a   : > { %p2143_p0 = scmp.ne.s32.totalorder %s213_s14, %s2142_s15  ;;  %p2150_p5 = scmp.lt.s32.totalorder %s213_s14, %s213_s14 }
  0x2b   : > { %p2151_p1 = scmp.lt.s32.totalorder %s2142_s15, %s2142_s15 }
  0x2c   : > { %p2145_p2 = pnand %p2143_p0, %p2107_p13 }
  0x2d   : > { %p2152_p9 = por %p2151_p1, %p2150_p5 }
  0x2e   : > { %p2146_p7 = pneg %p2145_p2 }
  0x2f   : > { %1948 = dma.hbm_to_vmem [thread:$0]  (!%p2503_p12), %s2923_s2, 2048, %s200_s11, [#allocation8], %s2900_s18, %s2900_s18, %s2902_s30  }
  0x30   : > { %p2153_p11 = pnand %p2152_p9, %p2146_p7 }
  0x32   : > { %2156 = shalt.err (!%p2153_p11)
}
  0x33   : > { %s2924_s3 = sld [smem:[#allocation26_spill]]  ;;  %s2168_s11 = scalar_lea.vmem %s226_s16, 2048 }
  0x34   : > { %p2169_p3 = scmp.ne.s32.totalorder %s226_s16, %s2168_s11  ;;  %p2176_p5 = scmp.lt.s32.totalorder %s226_s16, %s226_s16 }
  0x35   : > { %p2177_p7 = scmp.lt.s32.totalorder %s2168_s11, %s2168_s11 }
  0x36   : > { %p2171_p0 = pnand %p2169_p3, %p2107_p13 }
  0x37   : > { %p2178_p1 = por %p2177_p7, %p2176_p5 }
  0x38   : > { %p2172_p2 = pneg %p2171_p0 }
  0x39   : > { %1951 = dma.hbm_to_vmem [thread:$0]  (!%p2503_p12), %s2924_s3, 2048, %s213_s14, [#allocation11], %s2900_s18, %s2900_s18, %s2902_s30  }
  0x3a   : > { %p2179_p9 = pnand %p2178_p1, %p2172_p2 }
  0x3c   : > { %2182 = shalt.err (!%p2179_p9)
}
  0x3d   : > { %s2925_s4 = sld [smem:[#allocation27_spill]]  ;;  %s34_s12 = sadd.s32 1, %s2363_s26 }
  0x3e   : > { %p35_p3 = scmp.ge.s32.totalorder %s34_s12, 3  ;;  %s37_s14 = sadd.s32 1, %s2367_s27 }
  0x3f   : > { %s46_s13 = sadd.s32 1, %s2351_s23  ;;  %p53_p13 = scmp.ne.s32.totalorder %s2351_s23, %s2347_s22 }
  0x40   : > { %s2962_s12 = smov (%p35_p3, %s34_s12), 0  ;;  %s2964_s14 = smov (!%p35_p3, %s37_s14), %s2367_s27 }
  0x41   : > { %2926 = sst [smem:[#allocation22_spill]] %s2962_s12  ;;  %s42_s15 = ssub.s32 %s2363_s26, %s2962_s12 }
  0x42   : > { %p2910_p11 = scmp.eq.s32.totalorder %s2371_s28, 0  ;;  %p39_p0 = scmp.ge.s32.totalorder %s2964_s14, 2 }
  0x43   : > { %1954 = dma.hbm_to_vmem [thread:$0]  (!%p2503_p12), %s2925_s4, 2048, %s226_s16, [#allocation11], %s2900_s18, %s2900_s18, %s2902_s30  }
  0x44   : > { %p2927_p2 = scmp.eq.s32.totalorder %s2469_s29, 5  ;;  %p2561_p12 = por %p2910_p11, %p53_p13 }
  0x45   : > { %p1969_p7 = scmp.lt.s32.totalorder %s2371_s28, 6  ;;  %s2966_s14 = smov (%p39_p0, %s2964_s14), 0 }
  0x46   : > { %p2555_p5 = por %p2927_p2, %p53_p13  ;;  %2931 = sst [smem:[#allocation24_spill]] %s2966_s14 }
  0x47   : > { %s239_s11 = sand.u32 1, %s2351_s23   ;;  %s1925_s8 = smul.u32 48, %s2367_s27 }
  0x48   : > { %s2928_s17 = scalar_select %p2555_p5, 1, 0 }
  0x49   : > { %s2572_s10 = ssub.s32 %s2367_s27, %s2966_s14  ;;  %s1515_s30 = sshll.u32 %s239_s11, 7 }
  0x4a   : > { %2929 = sst [smem:[#allocation23_spill]] %s2928_s17  ;;  %s43_s18 = sor.u32 %s42_s15, %s2572_s10 }
  0x4b   : > { %p44_p9 = scmp.eq.s32.totalorder %s43_s18, 0  ;;  %s248_s2 = sadd.s32 %s2363_s26, %s1925_s8 }
  0x4c   : > { %s1516_s4 = sshll.u32 %s248_s2, 7  ;;  %s243_s12 = scalar_lea.vmem [#allocation4], %s1515_s30 }
  0x4d   : > { %s2578_s3 = scalar_select %p44_p9, %s2351_s23, %s46_s13  }
  0x4e   : > { %s251_s21 = sshll.u32 %s243_s12, 4  ;;  %s250_s25 = scalar_lea.hbm %s2892_s0, %s1516_s4  ;;  %s252_s21 = int_to_ptr.vmem [resolvable:$true] %s251_s21 }
  0x4f   : > { %p2587_p3 = pnand %p1969_p7, %p2561_p12  ;;  %s240_s15 = scalar_lea.sflag [#allocation5], %s239_s11 }
  0x50   : > { %s2196_s13 = scalar_lea.vmem %s252_s21, 2048  ;;  %s2378_s2 = smov [#allocation4]  }
  0x51   : > { %p2185_p13 = pneg %p2587_p3  ;;  %p2197_p0 = scmp.ne.s32.totalorder %s252_s21, %s2196_s13 }
  0x52   : > { %s2201_s30 = sshll.u32 %s2378_s2, 4  ;;  %s2202_s30 = int_to_ptr.vmem [resolvable:$false] %s2201_s30 }
  0x53   : > { %p2199_p2 = pnand %p2197_p0, %p2185_p13  ;;  %s2203_s4 = scalar_lea.vmem %s2202_s30, 4096 }
  0x54   : > { %p2204_p11 = scmp.lt.s32.totalorder %s252_s21, %s2202_s30  ;;  %p2205_p1 = scmp.lt.s32.totalorder %s2203_s4, %s2196_s13 }
  0x55   : > { %p2200_p9 = pneg %p2199_p2 }
  0x56   : > { %p2206_p8 = por %p2205_p1, %p2204_p11 }
  0x58   : > { %p2207_p12 = pnand %p2206_p8, %p2200_p9 }
  0x5a   : > { %2210 = shalt.err (!%p2207_p12)
}
  0x5b   : > { %s2379_s5 = smov 384   ;;  %s2933_s12 = smov 8  }
  0x5c   : > { %s2934_s17 = smov 128   ;;  %s72_s16 = sadd.s32 1, %s2339_s20 }
  0x5d   : > { %1958 = dma.hbm_to_vmem [thread:$0]  (!%p2587_p3), %s250_s25, 2048, %s252_s21, %s240_s15, %s2379_s5, %s2934_s17, %s2933_s12  }
  0x5e   : > { %p79_p11 = scmp.ne.s32.totalorder %s2339_s20, %s2335_s19  ;;  %p2935_p8 = scmp.eq.s32.totalorder %s2572_s10, 0 }
  0x5f   : > { %p2936_p1 = scmp.eq.s32.totalorder %s2371_s28, 0  ;;  %s263_s14 = sand.u32 1, %s2339_s20  }
  0x60   : > { %s2604_s11 = scalar_select %p2935_p8, %s2339_s20, %s72_s16  }
  0x61   : > { %p81_p13 = por %p79_p11, %p2936_p1  ;;  %s1532_s8 = sshll.u32 %s2367_s27, 11 }
  0x62   : > { %s1517_s13 = sshll.u32 %s263_s14, 7  ;;  %s271_s4 = scalar_lea.hbm %s2893_s1, %s1532_s8 }
  0x63   : > { %p2615_p0 = pnand %p1969_p7, %p81_p13  ;;  %s265_s21 = scalar_lea.vmem [#allocation7], %s1517_s13 }
  0x64   : > { %s272_s25 = sshll.u32 %s265_s21, 4  ;;  %s2938_s10 = sand.u32 1, %s2371_s28   ;;  %s273_s25 = int_to_ptr.vmem [resolvable:$true] %s272_s25 }
  0x65   : > { %s262_s15 = scalar_lea.sflag [#allocation8], %s2938_s10  ;;  %p2213_p3 = pneg %p2615_p0 }
  0x66   : > { %s2224_s5 = scalar_lea.vmem %s273_s25, 2048  ;;  %s2380_s16 = smov [#allocation7]  }
  0x67   : > { %p2225_p2 = scmp.ne.s32.totalorder %s273_s25, %s2224_s5  ;;  %s2229_s14 = sshll.u32 %s2380_s16, 4  ;;  %s2230_s14 = int_to_ptr.vmem [resolvable:$false] %s2229_s14 }
  0x68   : > { %s2231_s8 = scalar_lea.vmem %s2230_s14, 4096  ;;  %p2232_p7 = scmp.lt.s32.totalorder %s273_s25, %s2230_s14 }
  0x69   : > { %p2227_p9 = pnand %p2225_p2, %p2213_p3  ;;  %p2233_p11 = scmp.lt.s32.totalorder %s2231_s8, %s2224_s5 }
  0x6b   : > { %p2228_p12 = pneg %p2227_p9  ;;  %p2234_p8 = por %p2233_p11, %p2232_p7 }
  0x6d   : > { %p2235_p1 = pnand %p2234_p8, %p2228_p12 }
  0x6f   : > { %2238 = shalt.err (!%p2235_p1)
}
  0x70   : > { %1961 = dma.hbm_to_vmem [thread:$0]  (!%p2615_p0), %s271_s4, 2048, %s273_s25, %s262_s15, %s2934_s17, %s2934_s17, %s2933_s12  }
  0x71   : > { %284 = sbr.rel (%p2495_p10) target bundleno = 1084 (0x43c), region = 40  ;;  %s2631_s13 = sand.u32 (!%p2495_p10), 1, %s2347_s22  }
  0x72   : > { %s1521_s2 = sshll.u32 (!%p2495_p10), %s2631_s13, 7  ;;  %s287_s30 = scalar_lea.sflag (!%p2495_p10), [#allocation5], %s2631_s13 }
  0x73   : > { %s2635_s21 = scalar_lea.vmem (!%p2495_p10), [#allocation4], %s1521_s2 }
  0x76   : > { %2310 = dma.done.wait (%p2479_p4), %s287_s30, 2048  }
  0x77   : > { %2312 = vsyncadd (%p2479_p4), %s287_s30, 4294965248  ;;  %s295_s9 = sand.u32 1, %s2469_s29   ;;  %s297_s18 = sand.u32 1, %s2335_s19  }
  0x78   : > { %s1522_s12 = sshll.u32 %s297_s18, 7  ;;  %s296_s17 = scalar_lea.sflag [#allocation8], %s295_s9 }
  0x79   : > { %s2643_s4 = scalar_lea.vmem [#allocation7], %s1522_s12 }
  0x7a   : > { %2314 = dma.done.wait (%p2485_p6), %s296_s17, 2048  }
  0x7b   : > { %2316 = vsyncadd (%p2485_p6), %s296_s17, 4294965248  ;;  %p2939_p10 = scmp.eq.s32.totalorder %s2469_s29, 0 }
  0x7d   : > { %2318 = dma.done.wait (%p2939_p10), [#allocation8], 2048   ;;  %p2940_p13 = pmov %p2939_p10 }
  0x7e   : > { %p2941_p4 = pmov %p2939_p10 }
  0x7f   : > { %2320 = vsyncadd (%p2940_p13), [#allocation8], 4294965248 }
  0x80   : > { %2322 = dma.done.wait (%p2941_p4), [#allocation11], 4096   ;;  %p2942_p0 = pmov %p2941_p4 }
  0x81   : > { %s2657_s6 = scalar_lea.vmem [#allocation13], %s1521_s2  ;;  %p1527_p3 = scmp.ne.s32.totalorder %s2355_s24, 0 }
  0x82   : > { %2324 = vsyncadd (%p2942_p0), [#allocation11], 4294963200 }
  0x83   : > { %346 = sbr.rel (%p1527_p3) target bundleno = 518 (0x206), region = 64 }
  0x88   : > { %v2661_v0 = vld [vmem:[%s2643_s4] sm:$0xff]  ;;  %v2665_v1 = vld [vmem:[%s2643_s4 + $0x8] sm:$0xff]  ;;  %v2669_v2 = vld [vmem:[%s2643_s4 + $0x78] sm:$0xff] }
  0x89   : > { %379 = vxpose.xlu0.b32.start [1/16] %v2661_v0, 128  ;;  %v378_v3 = vld [vmem:[#allocation9 + $0x78] sm:$0xff]  ;;  %v377_v4 = vld [vmem:[#allocation9 + $0x70] sm:$0xff]  ;;  %1733 = vmatprep.subr.mxu1 %v2669_v2  ;;  %v2685_v8 = vld [vmem:[%s2643_s4 + $0x68] sm:$0xff] }
  0x8a   : > { %v2672_v5 = vld [vmem:[%s2643_s4 + $0x10] sm:$0xff]  ;;  %1677 = vmatprep.subr.mxu0 %v378_v3  ;;  %1734 = vmatpush3.msra.mxu1 %v2669_v2  ;;  %v2682_v7 = vld [vmem:[%s2643_s4 + $0x18] sm:$0xff]  ;;  %v376_v9 = vld [vmem:[#allocation9 + $0x68] sm:$0xff] }
  0x8b   : > { %v2676_v6 = vld [vmem:[%s2643_s4 + $0x70] sm:$0xff]  ;;  %1678 = vmatpush3.xpose.msra.mxu0 %v378_v3  ;;  %v2689_v10 = vld [vmem:[%s2643_s4 + $0x60] sm:$0xff]  ;;  %v573_v12 = vld [vmem:[#allocation12 + $0x8] sm:$0xff] }
  0x8c   : > { %1679 = vmatprep.subr.mxu0 %v377_v4  ;;  %1735 = vmatprep.subr.mxu1 %v2676_v6  ;;  %v572_v11 = vld [vmem:[#allocation12] sm:$0xff]  ;;  %v2693_v13 = vld [vmem:[%s2643_s4 + $0x58] sm:$0xff]  ;;  %v574_v15 = vld [vmem:[#allocation12 + $0x10] sm:$0xff]  ;;  %589 = vst [vmem:[#allocation2 + $0x58] sm:$0xff] %v573_v12 }
  0x8d   : > { %380 = vxpose.xlu0.b32.cont [2/16] %v2665_v1, 128  ;;  %1736 = vmatpush3.msra.mxu1 %v2676_v6  ;;  %v375_v14 = vld [vmem:[#allocation9 + $0x60] sm:$0xff]  ;;  %v575_v16 = vld [vmem:[#allocation12 + $0x18] sm:$0xff]  ;;  %588 = vst [vmem:[#allocation2 + $0x38] sm:$0xff] %v572_v11  ;;  %v577_v19 = vld [vmem:[#allocation12 + $0x28] sm:$0xff] }
  0x8e   : > { %1737 = vmatprep.subr.mxu1 %v2685_v8  ;;  %v576_v17 = vld [vmem:[#allocation12 + $0x20] sm:$0xff]  ;;  %v578_v20 = vld [vmem:[#allocation12 + $0x30] sm:$0xff]  ;;  %v579_v21 = vld [vmem:[#allocation12 + $0x38] sm:$0xff]  ;;  %590 = vst [vmem:[#allocation2 + $0x40] sm:$0xff] %v574_v15 }
  0x8f   : > { %1680 = vmatpush3.xpose.msra.mxu0 %v377_v4  ;;  %1738 = vmatpush3.msra.mxu1 %v2685_v8  ;;  %v2697_v18 = vld [vmem:[%s2643_s4 + $0x20] sm:$0xff]  ;;  %591 = vst [vmem:[#allocation2 + $0xc8] sm:$0xff] %v575_v16  ;;  %592 = vst [vmem:[#allocation2 + $0xe0] sm:$0xff] %v576_v17  ;;  %v581_v23 = vld [vmem:[#allocation12 + $0x48] sm:$0xff] }
  0x90   : > { %1681 = vmatprep.subr.mxu0 %v376_v9  ;;  %1739 = vmatprep.subr.mxu1 %v2689_v10  ;;  %v580_v22 = vld [vmem:[#allocation12 + $0x40] sm:$0xff]  ;;  %v582_v24 = vld [vmem:[#allocation12 + $0x50] sm:$0xff]  ;;  %593 = vst [vmem:[#allocation2 + $0x90] sm:$0xff] %v577_v19  ;;  %594 = vst [vmem:[#allocation2 + $0x70] sm:$0xff] %v578_v20 }
  0x91   : > { %381 = vxpose.xlu0.b32.cont [3/16] %v2672_v5, 128  ;;  %595 = vst [vmem:[#allocation2 + $0xc0] sm:$0xff] %v579_v21  ;;  %1740 = vmatpush3.msra.mxu1 %v2689_v10  ;;  %v583_v25 = vld [vmem:[#allocation12 + $0x58] sm:$0xff]  ;;  %v584_v26 = vld [vmem:[#allocation12 + $0x60] sm:$0xff]  ;;  %v585_v27 = vld [vmem:[#allocation12 + $0x68] sm:$0xff] }
  0x92   : > { %596 = vst [vmem:[#allocation2 + $0xa8] sm:$0xff] %v580_v22  ;;  %597 = vst [vmem:[#allocation2 + $0xd0] sm:$0xff] %v581_v23  ;;  %1741 = vmatprep.subr.mxu1 %v2693_v13  ;;  %v2704_v28 = vld [vmem:[%s2643_s4 + $0x50] sm:$0xff]  ;;  %v587_v30 = vld [vmem:[#allocation12 + $0x78] sm:$0xff] }
  0x93   : > { %598 = vst [vmem:[#allocation2 + $0x10] sm:$0xff] %v582_v24  ;;  %1682 = vmatpush3.xpose.msra.mxu0 %v376_v9  ;;  %v586_v29 = vld [vmem:[#allocation12 + $0x70] sm:$0xff]  ;;  %599 = vst [vmem:[#allocation2 + $0x28] sm:$0xff] %v583_v25  ;;  %1742 = vmatpush3.msra.mxu1 %v2693_v13  ;;  %v356_v31 = vld [vmem:[%s2643_s4 + $0x48] sm:$0xff] }
  0x94   : > { %600 = vst [vmem:[#allocation2 + $0xa0] sm:$0xff] %v584_v26  ;;  %601 = vst [vmem:[#allocation2 + $0xf8] sm:$0xff] %v585_v27  ;;  %1683 = vmatprep.subr.mxu0 %v375_v14  ;;  %1743 = vmatprep.subr.mxu1 %v2704_v28  ;;  %v374_v32 = vld [vmem:[#allocation9 + $0x58] sm:$0xff]  ;;  %v352_v33 = vld [vmem:[%s2643_s4 + $0x28] sm:$0xff] }
  0x95   : > { %382 = vxpose.xlu0.b32.cont [4/16] %v2682_v7, 128  ;;  %602 = vst [vmem:[#allocation2 + $0x20] sm:$0xff] %v586_v29  ;;  %603 = vst [vmem:[#allocation2 + $0x98] sm:$0xff] %v587_v30  ;;  %1744 = vmatpush3.msra.mxu1 %v2704_v28  ;;  %v355_v34 = vld [vmem:[%s2643_s4 + $0x40] sm:$0xff]  ;;  %v354_v35 = vld [vmem:[%s2643_s4 + $0x38] sm:$0xff] }
  0x96   : > { %1745 = vmatprep.subr.mxu1 %v356_v31  ;;  %v373_v36 = vld [vmem:[#allocation9 + $0x50] sm:$0xff]  ;;  %v372_v38 = vld [vmem:[#allocation9 + $0x48] sm:$0xff]  ;;  %v604_v39 = vld [vmem:[#allocation10] sm:$0xff] }
  0x97   : > { %1684 = vmatpush3.xpose.msra.mxu0 %v375_v14  ;;  %1746 = vmatpush3.msra.mxu1 %v356_v31  ;;  %v353_v37 = vld [vmem:[%s2643_s4 + $0x30] sm:$0xff]  ;;  %v371_v40 = vld [vmem:[#allocation9 + $0x40] sm:$0xff]  ;;  %v370_v41 = vld [vmem:[#allocation9 + $0x38] sm:$0xff] }
  0x98   : > { %1685 = vmatprep.subr.mxu0 %v374_v32  ;;  %1747 = vmatprep.subr.mxu1 %v355_v34  ;;  %v605_v42 = vld [vmem:[#allocation10 + $0x8] sm:$0xff]  ;;  %v606_v43 = vld [vmem:[#allocation10 + $0x10] sm:$0xff]  ;;  %v607_v45 = vld [vmem:[#allocation10 + $0x18] sm:$0xff] }
  0x99   : > { %383 = vxpose.xlu0.b32.cont [5/16] %v2697_v18, 128  ;;  %1748 = vmatpush3.msra.mxu1 %v355_v34  ;;  %v369_v44 = vld [vmem:[#allocation9 + $0x30] sm:$0xff]  ;;  %v608_v46 = vld [vmem:[#allocation10 + $0x20] sm:$0xff]  ;;  %v368_v47 = vld [vmem:[#allocation9 + $0x28] sm:$0xff] }
  0x9a   : > { %1749 = vmatprep.subr.mxu1 %v354_v35  ;;  %1765 = vmatprep.mubr.f32.mxu1 %v604_v39  ;;  %v609_v48 = vld [vmem:[#allocation10 + $0x28] sm:$0xff]  ;;  %v610_v49 = vld [vmem:[#allocation10 + $0x30] sm:$0xff]  ;;  %v367_v50 = vld [vmem:[#allocation9 + $0x20] sm:$0xff] }
  0x9b   : > { %1686 = vmatpush3.xpose.msra.mxu0 %v374_v32  ;;  %1750 = vmatpush3.msra.mxu1 %v354_v35  ;;  %v611_v51 = vld [vmem:[#allocation10 + $0x38] sm:$0xff]  ;;  %v612_v52 = vld [vmem:[#allocation10 + $0x40] sm:$0xff]  ;;  %v613_v54 = vld [vmem:[#allocation10 + $0x48] sm:$0xff] }
  0x9c   : > { %1687 = vmatprep.subr.mxu0 %v373_v36  ;;  %1751 = vmatprep.subr.mxu1 %v353_v37  ;;  %v366_v53 = vld [vmem:[#allocation9 + $0x18] sm:$0xff]  ;;  %v614_v55 = vld [vmem:[#allocation10 + $0x50] sm:$0xff]  ;;  %v616_v58 = vld [vmem:[#allocation10 + $0x60] sm:$0xff] }
  0x9d   : > { %384 = vxpose.xlu0.b32.cont [6/16] %v352_v33, 128  ;;  %1752 = vmatpush3.msra.mxu1 %v353_v37  ;;  %v365_v56 = vld [vmem:[#allocation9 + $0x10] sm:$0xff]  ;;  %v615_v57 = vld [vmem:[#allocation10 + $0x58] sm:$0xff]  ;;  %v364_v59 = vld [vmem:[#allocation9 + $0x8] sm:$0xff] }
  0x9e   : > { %1753 = vmatprep.subr.mxu1 %v352_v33  ;;  %v617_v60 = vld [vmem:[#allocation10 + $0x68] sm:$0xff]  ;;  %v618_v61 = vld [vmem:[#allocation10 + $0x70] sm:$0xff]  ;;  %v363_v62 = vld [vmem:[#allocation9] sm:$0xff] }
  0x9f   : > { %1688 = vmatpush3.xpose.msra.mxu0 %v373_v36  ;;  %1754 = vmatpush3.msra.mxu1 %v352_v33  ;;  %v619_v63 = vld [vmem:[#allocation10 + $0x78] sm:$0xff] }
  0xa0   : > { %1689 = vmatprep.subr.mxu0 %v372_v38  ;;  %1755 = vmatprep.subr.mxu1 %v2697_v18 }
  0xa1   : > { %385 = vxpose.xlu0.b32.cont [7/16] %v353_v37, 128  ;;  %1756 = vmatpush3.msra.mxu1 %v2697_v18 }
  0xa2   : > { %1757 = vmatprep.subr.mxu1 %v2682_v7 }
  0xa3   : > { %1690 = vmatpush3.xpose.msra.mxu0 %v372_v38  ;;  %1758 = vmatpush3.msra.mxu1 %v2682_v7 }
  0xa4   : > { %1691 = vmatprep.subr.mxu0 %v371_v40  ;;  %1759 = vmatprep.subr.mxu1 %v2672_v5 }
  0xa5   : > { %386 = vxpose.xlu0.b32.cont [8/16] %v354_v35, 128  ;;  %1760 = vmatpush3.msra.mxu1 %v2672_v5 }
  0xa6   : > { %1761 = vmatprep.subr.mxu1 %v2665_v1 }
  0xa7   : > { %1692 = vmatpush3.xpose.msra.mxu0 %v371_v40  ;;  %1762 = vmatpush3.msra.mxu1 %v2665_v1 }
  0xa8   : > { %1693 = vmatprep.subr.mxu0 %v370_v41  ;;  %1763 = vmatprep.subr.mxu1 %v2661_v0 }
  0xa9   : > { %387 = vxpose.xlu0.b32.cont [9/16] %v355_v34, 128  ;;  %1764 = vmatpush3.msra.mxu1 %v2661_v0 }
  0xaa   : > { %1766 = vmatmul.mubr.f32.vlgmr.msra.gmra.mxu1 %v605_v42 }
  0xab   : > { %1694 = vmatpush3.xpose.msra.mxu0 %v370_v41  ;;  %1768 = vmatprep.mubr.f32.mxu1 %v606_v43 }
  0xac   : > { %1695 = vmatprep.subr.mxu0 %v369_v44 }
  0xad   : > { %388 = vxpose.xlu0.b32.cont [10/16] %v356_v31, 128 }
  0xae   : > { %1769 = vmatmul.mubr.f32.gmra.mxu1 %v607_v45 }
  0xaf   : > { %1696 = vmatpush3.xpose.msra.mxu0 %v369_v44  ;;  %1771 = vmatprep.mubr.f32.mxu1 %v608_v46 }
  0xb0   : > { %1697 = vmatprep.subr.mxu0 %v368_v47 }
  0xb1   : > { %389 = vxpose.xlu0.b32.cont [11/16] %v2704_v28, 128 }
  0xb2   : > { %1772 = vmatmul.mubr.f32.gmra.mxu1 %v609_v48 }
  0xb3   : > { %1698 = vmatpush3.xpose.msra.mxu0 %v368_v47  ;;  %1774 = vmatprep.mubr.f32.mxu1 %v610_v49 }
  0xb4   : > { %1699 = vmatprep.subr.mxu0 %v367_v50 }
  0xb5   : > { %390 = vxpose.xlu0.b32.cont [12/16] %v2693_v13, 128 }
  0xb6   : > { %1775 = vmatmul.mubr.f32.gmra.mxu1 %v611_v51 }
  0xb7   : > { %1700 = vmatpush3.xpose.msra.mxu0 %v367_v50  ;;  %1777 = vmatprep.mubr.f32.mxu1 %v612_v52 }
  0xb8   : > { %1701 = vmatprep.subr.mxu0 %v366_v53 }
  0xb9   : > { %391 = vxpose.xlu0.b32.cont [13/16] %v2689_v10, 128 }
  0xba   : > { %1778 = vmatmul.mubr.f32.gmra.mxu1 %v613_v54 }
  0xbb   : > { %1702 = vmatpush3.xpose.msra.mxu0 %v366_v53  ;;  %1780 = vmatprep.mubr.f32.mxu1 %v614_v55 }
  0xbc   : > { %1703 = vmatprep.subr.mxu0 %v365_v56 }
  0xbd   : > { %392 = vxpose.xlu0.b32.cont [14/16] %v2685_v8, 128 }
  0xbe   : > { %1781 = vmatmul.mubr.f32.gmra.mxu1 %v615_v57 }
  0xbf   : > { %1704 = vmatpush3.xpose.msra.mxu0 %v365_v56  ;;  %1783 = vmatprep.mubr.f32.mxu1 %v616_v58 }
  0xc0   : > { %1705 = vmatprep.subr.mxu0 %v364_v59 }
  0xc1   : > { %393 = vxpose.xlu0.b32.cont [15/16] %v2676_v6, 128 }
  0xc2   : > { %1784 = vmatmul.mubr.f32.gmra.mxu1 %v617_v60 }
  0xc3   : > { %1706 = vmatpush3.xpose.msra.mxu0 %v364_v59  ;;  %1786 = vmatprep.mubr.f32.mxu1 %v618_v61 }
  0xc4   : > { %1707 = vmatprep.subr.mxu0 %v363_v62 }
  0xc5   : > { %394 = vxpose.xlu0.b32.end [16/16] %v2669_v2, 128 }
  0xc6   : > { %1787 = vmatmul.mubr.f32.gmra.mxu1 %v619_v63 }
  0xc7   : > { %1708 = vmatpush3.xpose.msra.mxu0 %v363_v62 }
 0x105   : > { %v395_v0 = vpop.trf.xlu0 }
 0x106   : > { %1709 = vmatprep.mubr.f32.mxu0 %v395_v0 }
 0x109   : > { %v396_v1 = vpop.trf.xlu0 }
 0x10a   : > { %1710 = vmatmul.mubr.f32.vlgmr.msra.gmra.mxu0 %v396_v1 }
 0x10d   : > { %v397_v3 = vpop.trf.xlu0 }
 0x10e   : > { %1712 = vmatprep.mubr.f32.mxu0 %v397_v3 }
 0x111   : > { %v398_v4 = vpop.trf.xlu0 }
 0x112   : > { %1713 = vmatmul.mubr.f32.gmra.mxu0 %v398_v4 }
 0x115   : > { %v399_v5 = vpop.trf.xlu0 }
 0x116   : > { %1715 = vmatprep.mubr.f32.mxu0 %v399_v5 }
 0x119   : > { %v400_v6 = vpop.trf.xlu0 }
 0x11a   : > { %1716 = vmatmul.mubr.f32.gmra.mxu0 %v400_v6 }
 0x11d   : > { %v401_v2 = vpop.trf.xlu0 }
 0x11e   : > { %1718 = vmatprep.mubr.f32.mxu0 %v401_v2 }
 0x121   : > { %v402_v7 = vpop.trf.xlu0 }
 0x122   : > { %1719 = vmatmul.mubr.f32.gmra.mxu0 %v402_v7 }
 0x125   : > { %v403_v8 = vpop.trf.xlu0 }
 0x126   : > { %1721 = vmatprep.mubr.f32.mxu0 %v403_v8 }
 0x129   : > { %v404_v9 = vpop.trf.xlu0 }
 0x12a   : > { %1722 = vmatmul.mubr.f32.gmra.mxu0 %v404_v9 }
 0x12d   : > { %v405_v10 = vpop.trf.xlu0 }
 0x12e   : > { %1724 = vmatprep.mubr.f32.mxu0 %v405_v10 }
 0x131   : > { %v406_v11 = vpop.trf.xlu0 }
 0x132   : > { %1725 = vmatmul.mubr.f32.gmra.mxu0 %v406_v11 }
 0x135   : > { %v407_v12 = vpop.trf.xlu0 }
 0x136   : > { %1727 = vmatprep.mubr.f32.mxu0 %v407_v12 }
 0x139   : > { %v408_v13 = vpop.trf.xlu0 }
 0x13a   : > { %1728 = vmatmul.mubr.f32.gmra.mxu0 %v408_v13 }
 0x13d   : > { %v409_v14 = vpop.trf.xlu0 }
 0x13e   : > { %1730 = vmatprep.mubr.f32.mxu0 %v409_v14 }
 0x141   : > { %v410_v15 = vpop.trf.xlu0 }
 0x142   : > { %1731 = vmatmul.mubr.f32.gmra.mxu0 %v410_v15 }
 0x16a   : > { %v1767_v16 = vpop.f32.mrf.mxu1 }
 0x16b   : > { %766 = vst [vmem:[#allocation3 + $0x48] sm:$0xff] %v1767_v16 }
 0x16c   : > { %v686_v17 = vpop.f32.mrf.mxu1 }
 0x16d   : > { %765 = vst [vmem:[#allocation3] sm:$0xff] %v686_v17 }
 0x16e   : > { %v1770_v18 = vpop.f32.mrf.mxu1 }
 0x16f   : > { %768 = vst [vmem:[#allocation3 + $0x78] sm:$0xff] %v1770_v18 }
 0x170   : > { %v696_v19 = vpop.f32.mrf.mxu1 }
 0x171   : > { %767 = vst [vmem:[#allocation3 + $0x68] sm:$0xff] %v696_v19 }
 0x172   : > { %v1773_v20 = vpop.f32.mrf.mxu1 }
 0x173   : > { %770 = vst [vmem:[#allocation3 + $0x50] sm:$0xff] %v1773_v20 }
 0x174   : > { %v706_v21 = vpop.f32.mrf.mxu1 }
 0x175   : > { %769 = vst [vmem:[#allocation3 + $0x8] sm:$0xff] %v706_v21 }
 0x176   : > { %v1776_v22 = vpop.f32.mrf.mxu1 }
 0x177   : > { %772 = vst [vmem:[#allocation3 + $0x38] sm:$0xff] %v1776_v22 }
 0x178   : > { %v716_v23 = vpop.f32.mrf.mxu1 }
 0x179   : > { %771 = vst [vmem:[#allocation3 + $0x40] sm:$0xff] %v716_v23 }
 0x17a   : > { %v1779_v24 = vpop.f32.mrf.mxu1 }
 0x17b   : > { %774 = vst [vmem:[#allocation3 + $0x60] sm:$0xff] %v1779_v24 }
 0x17c   : > { %v726_v25 = vpop.f32.mrf.mxu1 }
 0x17d   : > { %773 = vst [vmem:[#allocation3 + $0x70] sm:$0xff] %v726_v25 }
 0x17e   : > { %v1782_v26 = vpop.f32.mrf.mxu1 }
 0x17f   : > { %776 = vst [vmem:[#allocation3 + $0x20] sm:$0xff] %v1782_v26 }
 0x180   : > { %v736_v27 = vpop.f32.mrf.mxu1 }
 0x181   : > { %775 = vst [vmem:[#allocation3 + $0x18] sm:$0xff] %v736_v27 }
 0x182   : > { %v1785_v28 = vpop.f32.mrf.mxu1 }
 0x183   : > { %778 = vst [vmem:[#allocation3 + $0x30] sm:$0xff] %v1785_v28 }
 0x184   : > { %v746_v29 = vpop.f32.mrf.mxu1 }
 0x185   : > { %777 = vst [vmem:[#allocation3 + $0x10] sm:$0xff] %v746_v29 }
 0x186   : > { %v1788_v30 = vpop.f32.mrf.mxu1 }
 0x187   : > { %780 = vst [vmem:[#allocation3 + $0x58] sm:$0xff] %v1788_v30 }
 0x188   : > { %v756_v31 = vpop.f32.mrf.mxu1 }
 0x189   : > { %779 = vst [vmem:[#allocation3 + $0x28] sm:$0xff] %v756_v31 }
 0x1ca   : > { %v1711_v32 = vpop.f32.mrf.mxu0 }
 0x1cb   : > { %557 = vst [vmem:[#allocation2] sm:$0xff] %v1711_v32 }
 0x1cc   : > { %v477_v33 = vpop.f32.mrf.mxu0 }
 0x1cd   : > { %556 = vst [vmem:[#allocation2 + $0xb0] sm:$0xff] %v477_v33 }
 0x1d2   : > { %v1714_v34 = vpop.f32.mrf.mxu0 }
 0x1d3   : > { %559 = vst [vmem:[#allocation2 + $0x18] sm:$0xff] %v1714_v34 }
 0x1d4   : > { %v487_v35 = vpop.f32.mrf.mxu0 }
 0x1d5   : > { %558 = vst [vmem:[#allocation2 + $0xd8] sm:$0xff] %v487_v35 }
 0x1da   : > { %v1717_v36 = vpop.f32.mrf.mxu0 }
 0x1db   : > { %561 = vst [vmem:[#allocation2 + $0x68] sm:$0xff] %v1717_v36 }
 0x1dc   : > { %v497_v37 = vpop.f32.mrf.mxu0 }
 0x1dd   : > { %560 = vst [vmem:[#allocation2 + $0x50] sm:$0xff] %v497_v37 }
 0x1e2   : > { %v1720_v38 = vpop.f32.mrf.mxu0 }
 0x1e3   : > { %563 = vst [vmem:[#allocation2 + $0x48] sm:$0xff] %v1720_v38 }
 0x1e4   : > { %v507_v39 = vpop.f32.mrf.mxu0 }
 0x1e5   : > { %562 = vst [vmem:[#allocation2 + $0x30] sm:$0xff] %v507_v39 }
 0x1ea   : > { %v1723_v40 = vpop.f32.mrf.mxu0 }
 0x1eb   : > { %565 = vst [vmem:[#allocation2 + $0x88] sm:$0xff] %v1723_v40 }
 0x1ec   : > { %v517_v41 = vpop.f32.mrf.mxu0 }
 0x1ed   : > { %564 = vst [vmem:[#allocation2 + $0x80] sm:$0xff] %v517_v41 }
 0x1f2   : > { %v1726_v42 = vpop.f32.mrf.mxu0 }
 0x1f3   : > { %567 = vst [vmem:[#allocation2 + $0xb8] sm:$0xff] %v1726_v42 }
 0x1f4   : > { %v527_v43 = vpop.f32.mrf.mxu0 }
 0x1f5   : > { %566 = vst [vmem:[#allocation2 + $0xe8] sm:$0xff] %v527_v43 }
 0x1fa   : > { %v1729_v44 = vpop.f32.mrf.mxu0 }
 0x1fb   : > { %569 = vst [vmem:[#allocation2 + $0xf0] sm:$0xff] %v1729_v44 }
 0x1fc   : > { %v537_v45 = vpop.f32.mrf.mxu0 }
 0x1fd   : > { %568 = vst [vmem:[#allocation2 + $0x60] sm:$0xff] %v537_v45 }
 0x202   : > { %v1732_v46 = vpop.f32.mrf.mxu0 }
 0x203   : > { %571 = vst [vmem:[#allocation2 + $0x78] sm:$0xff] %v1732_v46 }
 0x204   : > { %v547_v47 = vpop.f32.mrf.mxu0 }
 0x205   : > { %570 = vst [vmem:[#allocation2 + $0x8] sm:$0xff] %v547_v47 }
 0x206 PF: > { %v796_v48 = vld [vmem:[%s2635_s21 + $0x78] sm:$0xff]  ;;  %v795_v49 = vld [vmem:[%s2635_s21 + $0x70] sm:$0xff]  ;;  %v794_v50 = vld [vmem:[%s2635_s21 + $0x68] sm:$0xff]  ;;  %s2943_s29 = sld [smem:[#allocation20_spill]]  ;;  %s1369_s15 = sshll.u32 %s2657_s6, 4  ;;  %s2823_s15 = int_to_ptr.vmem [resolvable:$true] %s1369_s15 }
 0x207   : > { %1789 = vmatprep.subr.mxu0 %v796_v48  ;;  %v793_v51 = vld [vmem:[%s2635_s21 + $0x60] sm:$0xff]  ;;  %v797_v52 = vld [vmem:[#allocation2 + $0xb0] sm:$0xff]  ;;  %v792_v53 = vld [vmem:[%s2635_s21 + $0x58] sm:$0xff]  ;;  %s2945_s14 = sld [smem:[#allocation28_spill]]  ;;  %s1355_s2 = scalar_lea.sflag [#allocation6], %s2631_s13 }
 0x208   : > { %1790 = vmatpush3.msra.mxu0 %v796_v48  ;;  %1821 = vmatprep.mubr.f32.mxu0 %v797_v52  ;;  %v791_v54 = vld [vmem:[%s2635_s21 + $0x50] sm:$0xff]  ;;  %v790_v55 = vld [vmem:[%s2635_s21 + $0x48] sm:$0xff]  ;;  %v789_v56 = vld [vmem:[%s2635_s21 + $0x40] sm:$0xff]  ;;  %s2239_s30 = scalar_lea.vmem %s2823_s15, 2048 }
 0x209   : > { %1791 = vmatprep.subr.mxu0 %v795_v49  ;;  %v788_v57 = vld [vmem:[%s2635_s21 + $0x38] sm:$0xff]  ;;  %v787_v58 = vld [vmem:[%s2635_s21 + $0x30] sm:$0xff]  ;;  %v786_v59 = vld [vmem:[%s2635_s21 + $0x28] sm:$0xff]  ;;  %p2240_p6 = scmp.ne.s32.totalorder %s2823_s15, %s2239_s30 }
 0x20a   : > { %1792 = vmatpush3.msra.mxu0 %v795_v49  ;;  %v785_v60 = vld [vmem:[%s2635_s21 + $0x20] sm:$0xff]  ;;  %v784_v61 = vld [vmem:[%s2635_s21 + $0x18] sm:$0xff]  ;;  %v783_v62 = vld [vmem:[%s2635_s21 + $0x10] sm:$0xff] }
 0x20b   : > { %1793 = vmatprep.subr.mxu0 %v794_v50  ;;  %v782_v63 = vld [vmem:[%s2635_s21 + $0x8] sm:$0xff]  ;;  %v781_v0 = vld [vmem:[%s2635_s21] sm:$0xff]  ;;  %v799_v3 = vld [vmem:[#allocation2 + $0xd8] sm:$0xff]  ;;  %p2241_p2 = pnand %p2240_p6, %p2555_p5  ;;  %s2381_s21 = smov [#allocation13]  }
 0x20c   : > { %1794 = vmatpush3.msra.mxu0 %v794_v50  ;;  %v798_v1 = vld [vmem:[#allocation2] sm:$0xff]  ;;  %v800_v4 = vld [vmem:[#allocation2 + $0x18] sm:$0xff]  ;;  %v801_v5 = vld [vmem:[#allocation2 + $0x50] sm:$0xff]  ;;  %s1926_s7 = smul.u32 48, %s2943_s29  ;;  %s2243_s9 = sshll.u32 %s2381_s21, 4  ;;  %s2244_s9 = int_to_ptr.vmem [resolvable:$false] %s2243_s9 }
 0x20d   : > { %1795 = vmatprep.subr.mxu0 %v793_v51  ;;  %v802_v6 = vld [vmem:[#allocation2 + $0x68] sm:$0xff]  ;;  %v803_v2 = vld [vmem:[#allocation2 + $0x30] sm:$0xff]  ;;  %v805_v8 = vld [vmem:[#allocation2 + $0x80] sm:$0xff]  ;;  %p2242_p9 = pneg %p2241_p2  ;;  %s2245_s18 = scalar_lea.vmem %s2244_s9, 4096 }
 0x20e   : > { %1796 = vmatpush3.msra.mxu0 %v793_v51  ;;  %v804_v7 = vld [vmem:[#allocation2 + $0x48] sm:$0xff]  ;;  %v808_v11 = vld [vmem:[#allocation2 + $0xb8] sm:$0xff]  ;;  %v809_v12 = vld [vmem:[#allocation2 + $0x60] sm:$0xff]  ;;  %s1366_s25 = sadd.s32 %s2355_s24, %s1926_s7  ;;  %p2246_p12 = scmp.lt.s32.totalorder %s2823_s15, %s2244_s9 }
 0x20f   : > { %1797 = vmatprep.subr.mxu0 %v792_v53  ;;  %v806_v9 = vld [vmem:[#allocation2 + $0x88] sm:$0xff]  ;;  %v810_v13 = vld [vmem:[#allocation2 + $0xf0] sm:$0xff]  ;;  %v812_v15 = vld [vmem:[#allocation2 + $0x78] sm:$0xff]  ;;  %s1529_s5 = sshll.u32 %s1366_s25, 7  ;;  %p2247_p7 = scmp.lt.s32.totalorder %s2245_s18, %s2239_s30 }
 0x210   : > { %1798 = vmatpush3.msra.mxu0 %v792_v53  ;;  %v807_v10 = vld [vmem:[#allocation2 + $0xe8] sm:$0xff]  ;;  %v813_v16 = vld [vmem:[#allocation2 + $0x38] sm:$0xff]  ;;  %v829_v17 = vld [vmem:[#allocation3] sm:$0xff]  ;;  %s2829_s8 = scalar_lea.hbm %s2945_s14, %s1529_s5 }
 0x211   : > { %1799 = vmatprep.subr.mxu0 %v791_v54  ;;  %v811_v14 = vld [vmem:[#allocation2 + $0x8] sm:$0xff]  ;;  %1901 = vmatprep.mubr.f32.mxu1 %v829_v17  ;;  %v814_v18 = vld [vmem:[#allocation2 + $0x58] sm:$0xff]  ;;  %v815_v19 = vld [vmem:[#allocation2 + $0x40] sm:$0xff]  ;;  %p2248_p11 = por %p2247_p7, %p2246_p12 }
 0x212   : > { %1800 = vmatpush3.msra.mxu0 %v791_v54  ;;  %v816_v20 = vld [vmem:[#allocation2 + $0xc8] sm:$0xff]  ;;  %v817_v21 = vld [vmem:[#allocation2 + $0xe0] sm:$0xff]  ;;  %v818_v22 = vld [vmem:[#allocation2 + $0x90] sm:$0xff] }
 0x213   : > { %1801 = vmatprep.subr.mxu0 %v790_v55  ;;  %v819_v23 = vld [vmem:[#allocation2 + $0x70] sm:$0xff]  ;;  %v820_v24 = vld [vmem:[#allocation2 + $0xc0] sm:$0xff]  ;;  %v821_v25 = vld [vmem:[#allocation2 + $0xa8] sm:$0xff]  ;;  %p2249_p8 = pnand %p2248_p11, %p2242_p9 }
 0x214   : > { %1802 = vmatpush3.msra.mxu0 %v790_v55  ;;  %v822_v26 = vld [vmem:[#allocation2 + $0xd0] sm:$0xff]  ;;  %v824_v30 = vld [vmem:[#allocation2 + $0x28] sm:$0xff]  ;;  %v825_v32 = vld [vmem:[#allocation2 + $0xa0] sm:$0xff] }
 0x215   : > { %1803 = vmatprep.subr.mxu0 %v789_v56  ;;  %v823_v28 = vld [vmem:[#allocation2 + $0x10] sm:$0xff]  ;;  %v826_v34 = vld [vmem:[#allocation2 + $0xf8] sm:$0xff]  ;;  %v827_v36 = vld [vmem:[#allocation2 + $0x20] sm:$0xff] }
 0x216   : > { %1804 = vmatpush3.msra.mxu0 %v789_v56  ;;  %v828_v38 = vld [vmem:[#allocation2 + $0x98] sm:$0xff] }
 0x217   : > { %1805 = vmatprep.subr.mxu0 %v788_v57 }
 0x218   : > { %1806 = vmatpush3.msra.mxu0 %v788_v57 }
 0x219   : > { %1807 = vmatprep.subr.mxu0 %v787_v58 }
 0x21a   : > { %1808 = vmatpush3.msra.mxu0 %v787_v58 }
 0x21b   : > { %1809 = vmatprep.subr.mxu0 %v786_v59 }
 0x21c   : > { %1810 = vmatpush3.msra.mxu0 %v786_v59 }
 0x21d   : > { %1811 = vmatprep.subr.mxu0 %v785_v60 }
 0x21e   : > { %1812 = vmatpush3.msra.mxu0 %v785_v60 }
 0x21f   : > { %1813 = vmatprep.subr.mxu0 %v784_v61 }
 0x220   : > { %1814 = vmatpush3.msra.mxu0 %v784_v61 }
 0x221   : > { %1815 = vmatprep.subr.mxu0 %v783_v62 }
 0x222   : > { %1816 = vmatpush3.msra.mxu0 %v783_v62 }
 0x223   : > { %1817 = vmatprep.subr.mxu0 %v782_v63 }
 0x224   : > { %1818 = vmatpush3.msra.mxu0 %v782_v63 }
 0x225   : > { %1819 = vmatprep.subr.mxu0 %v781_v0 }
 0x226   : > { %1820 = vmatpush3.msra.mxu0 %v781_v0 }
 0x227   : > { %1822 = vmatmul.mubr.f32.vlgmr.msra.gmra.mxu0 %v798_v1 }
 0x228   : > { %1824 = vmatprep.mubr.f32.mxu0 %v799_v3 }
 0x22b   : > { %1825 = vmatmul.mubr.f32.gmra.mxu0 %v800_v4 }
 0x22c   : > { %1827 = vmatprep.mubr.f32.mxu0 %v801_v5 }
 0x22f   : > { %1828 = vmatmul.mubr.f32.gmra.mxu0 %v802_v6 }
 0x230   : > { %1830 = vmatprep.mubr.f32.mxu0 %v803_v2 }
 0x233   : > { %1831 = vmatmul.mubr.f32.gmra.mxu0 %v804_v7 }
 0x234   : > { %1833 = vmatprep.mubr.f32.mxu0 %v805_v8 }
 0x237   : > { %1834 = vmatmul.mubr.f32.gmra.mxu0 %v806_v9 }
 0x238   : > { %1836 = vmatprep.mubr.f32.mxu0 %v807_v10 }
 0x23b   : > { %1837 = vmatmul.mubr.f32.gmra.mxu0 %v808_v11 }
 0x23c   : > { %1839 = vmatprep.mubr.f32.mxu0 %v809_v12 }
 0x23f   : > { %1840 = vmatmul.mubr.f32.gmra.mxu0 %v810_v13 }
 0x240   : > { %1842 = vmatprep.mubr.f32.mxu0 %v811_v14 }
 0x243   : > { %1843 = vmatmul.mubr.f32.gmra.mxu0 %v812_v15 }
 0x244   : > { %1845 = vmatprep.mubr.f32.mxu0 %v813_v16 }
 0x247   : > { %1846 = vmatmul.mubr.f32.gmra.mxu0 %v814_v18 }
 0x248   : > { %1848 = vmatprep.mubr.f32.mxu0 %v815_v19 }
 0x24b   : > { %1849 = vmatmul.mubr.f32.gmra.mxu0 %v816_v20 }
 0x24c   : > { %1851 = vmatprep.mubr.f32.mxu0 %v817_v21 }
 0x24f   : > { %1852 = vmatmul.mubr.f32.gmra.mxu0 %v818_v22 }
 0x250   : > { %1854 = vmatprep.mubr.f32.mxu0 %v819_v23 }
 0x253   : > { %1855 = vmatmul.mubr.f32.gmra.mxu0 %v820_v24 }
 0x254   : > { %1857 = vmatprep.mubr.f32.mxu0 %v821_v25 }
 0x257   : > { %1858 = vmatmul.mubr.f32.gmra.mxu0 %v822_v26 }
 0x258   : > { %1860 = vmatprep.mubr.f32.mxu0 %v823_v28 }
 0x25b   : > { %1861 = vmatmul.mubr.f32.gmra.mxu0 %v824_v30 }
 0x25c   : > { %1863 = vmatprep.mubr.f32.mxu0 %v825_v32 }
 0x25f   : > { %1864 = vmatmul.mubr.f32.gmra.mxu0 %v826_v34 }
 0x260   : > { %1866 = vmatprep.mubr.f32.mxu0 %v827_v36 }
 0x263   : > { %1867 = vmatmul.mubr.f32.gmra.mxu0 %v828_v38 }
 0x2e7   : > { %v2747_v27 = vpop.f32.mrf.mxu0 }
 0x2e9   : > { %v911_v29 = vpop.f32.mrf.mxu0 }
 0x2eb   : > { %v2749_v31 = vpop.f32.mrf.mxu0 }
 0x2ed   : > { %v2751_v33 = vpop.f32.mrf.mxu0 }
 0x2ef   : > { %v2753_v35 = vpop.f32.mrf.mxu0 }
 0x2f0   : > { %v1071_v48 = vmax.f32 %v2747_v27, %v2753_v35 }
 0x2f1   : > { %v2755_v37 = vpop.f32.mrf.mxu0 }
 0x2f2   : > { %v1070_v46 = vmax.f32 %v911_v29, %v2755_v37 }
 0x2f3   : > { %v2757_v39 = vpop.f32.mrf.mxu0 }
 0x2f4   : > { %v1073_v49 = vmax.f32 %v2749_v31, %v2757_v39 }
 0x2f5   : > { %v2759_v40 = vpop.f32.mrf.mxu0 }
 0x2f6   : > { %v1072_v50 = vmax.f32 %v2751_v33, %v2759_v40 }
 0x2f7   : > { %v2761_v41 = vpop.f32.mrf.mxu0 }
 0x2f8   : > { %v1075_v53 = vmax.f32 %v1071_v48, %v2761_v41 }
 0x2f9   : > { %v2763_v42 = vpop.f32.mrf.mxu0 }
 0x2fa   : > { %v1074_v51 = vmax.f32 %v1070_v46, %v2763_v42 }
 0x2fb   : > { %v1838_v43 = vpop.f32.mrf.mxu0 }
 0x2fc   : > { %v1077_v54 = vmax.f32 %v1073_v49, %v1838_v43 }
 0x2fd   : > { %v961_v44 = vpop.f32.mrf.mxu0 }
 0x2fe   : > { %v1076_v55 = vmax.f32 %v1072_v50, %v961_v44 }
 0x2ff   : > { %v1841_v45 = vpop.f32.mrf.mxu0 }
 0x300   : > { %v1079_v58 = vmax.f32 %v1075_v53, %v1841_v45 }
 0x301   : > { %v971_v47 = vpop.f32.mrf.mxu0 }
 0x302   : > { %v1078_v56 = vmax.f32 %v1074_v51, %v971_v47 }
 0x303   : > { %v1844_v52 = vpop.f32.mrf.mxu0 }
 0x304   : > { %v1081_v59 = vmax.f32 %v1077_v54, %v1844_v52  ;;  %v1082_v61 = vmax.f32 %v1078_v56, %v1079_v58 }
 0x305   : > { %v981_v57 = vpop.f32.mrf.mxu0 }
 0x306   : > { %v1080_v60 = vmax.f32 %v1076_v55, %v981_v57 }
 0x308   : > { %v1083_v62 = vmax.f32 %v1080_v60, %v1081_v59 }
 0x30a   : > { %v1084_v63 = vmax.f32 %v1082_v61, %v1083_v62 }
 0x30c   : > { %v1085_v0 = vrot.slane %v1084_v63, 4 }
 0x30e   : > { %v1086_v1 = vmax.f32 %v1084_v63, %v1085_v0 }
 0x310   : > { %v1087_v3 = vrot.slane %v1086_v1, 2 }
 0x312   : > { %v1088_v4 = vmax.f32 %v1086_v1, %v1087_v3 }
 0x314   : > { %v1089_v5 = vrot.slane %v1088_v4, 1 }
 0x316   : > { %v1090_v6 = vmax.f32 %v1088_v4, %v1089_v5  ;;  %v830_v4 = vld [vmem:[#allocation3 + $0x48] sm:$0xff] }
 0x318   : > { %v1105_v2 = vsub.f32 %v981_v57, %v1090_v6  ;;  %v1106_v7 = vsub.f32 %v1844_v52, %v1090_v6  ;;  %v1104_v8 = vsub.f32 %v1841_v45, %v1090_v6  ;;  %v1103_v9 = vsub.f32 %v971_v47, %v1090_v6 }
 0x319   : > { %v1091_v11 = vsub.f32 %v911_v29, %v1090_v6  ;;  %v1092_v13 = vsub.f32 %v2747_v27, %v1090_v6  ;;  %v1102_v15 = vsub.f32 %v1838_v43, %v1090_v6  ;;  %v1093_v17 = vsub.f32 %v2751_v33, %v1090_v6 }
 0x31a   : > { %v1137_v10 = vmul.f32 1.442695, %v1106_v7  ;;  %v1135_v12 = vmul.f32 1.442695, %v1105_v2  ;;  %v1133_v14 = vmul.f32 1.442695, %v1104_v8  ;;  %v1101_v18 = vsub.f32 %v961_v44, %v1090_v6 }
 0x31b   : > { %v1131_v16 = vmul.f32 1.442695, %v1103_v9  ;;  %v1107_v19 = vmul.f32 1.442695, %v1091_v11  ;;  %v1094_v20 = vsub.f32 %v2749_v31, %v1090_v6  ;;  %v1109_v21 = vmul.f32 1.442695, %v1092_v13 }
 0x31c   : > { %2071 = vpow2.f32 %v1137_v10  ;;  %v1129_v22 = vmul.f32 1.442695, %v1102_v15  ;;  %v1095_v23 = vsub.f32 %v2755_v37, %v1090_v6  ;;  %v1111_v24 = vmul.f32 1.442695, %v1093_v17  ;;  %v832_v7 = vld [vmem:[#allocation3 + $0x78] sm:$0xff]  ;;  %v833_v8 = vld [vmem:[#allocation3 + $0x8] sm:$0xff] }
 0x31d   : > { %2073 = vpow2.f32 %v1135_v12  ;;  %v1127_v25 = vmul.f32 1.442695, %v1101_v18  ;;  %v1096_v26 = vsub.f32 %v2753_v35, %v1090_v6  ;;  %v1100_v27 = vsub.f32 %v2761_v41, %v1090_v6  ;;  %v834_v9 = vld [vmem:[#allocation3 + $0x50] sm:$0xff]  ;;  %v835_v10 = vld [vmem:[#allocation3 + $0x40] sm:$0xff]  ;;  %v836_v11 = vld [vmem:[#allocation3 + $0x38] sm:$0xff] }
 0x31e   : > { %2075 = vpow2.f32 %v1133_v14  ;;  %v1113_v28 = vmul.f32 1.442695, %v1094_v20  ;;  %v1097_v29 = vsub.f32 %v2759_v40, %v1090_v6  ;;  %v1099_v30 = vsub.f32 %v2763_v42, %v1090_v6  ;;  %v837_v12 = vld [vmem:[#allocation3 + $0x70] sm:$0xff]  ;;  %v838_v13 = vld [vmem:[#allocation3 + $0x60] sm:$0xff]  ;;  %v839_v14 = vld [vmem:[#allocation3 + $0x18] sm:$0xff] }
 0x31f   : > { %2077 = vpow2.f32 %v1131_v16  ;;  %v1115_v31 = vmul.f32 1.442695, %v1095_v23  ;;  %v1117_v32 = vmul.f32 1.442695, %v1096_v26  ;;  %v1098_v33 = vsub.f32 %v2757_v39, %v1090_v6  ;;  %v831_v6 = vld [vmem:[#allocation3 + $0x68] sm:$0xff]  ;;  %v840_v15 = vld [vmem:[#allocation3 + $0x20] sm:$0xff]  ;;  %v1847_v23 = vpop.f32.mrf.mxu0 }
 0x320   : > { %2079 = vpow2.f32 %v1107_v19  ;;  %v1125_v34 = vmul.f32 1.442695, %v1100_v27  ;;  %v1119_v36 = vmul.f32 1.442695, %v1097_v29  ;;  %v1123_v35 = vmul.f32 1.442695, %v1099_v30 }
 0x321   : > { %2081 = vpow2.f32 %v1109_v21  ;;  %v1121_v38 = vmul.f32 1.442695, %v1098_v33  ;;  %v841_v16 = vld [vmem:[#allocation3 + $0x10] sm:$0xff]  ;;  %v843_v18 = vld [vmem:[#allocation3 + $0x28] sm:$0xff]  ;;  %v844_v19 = vld [vmem:[#allocation3 + $0x58] sm:$0xff] }
 0x322   : > { %2083 = vpow2.f32 %v1129_v22  ;;  %v842_v17 = vld [vmem:[#allocation3 + $0x30] sm:$0xff] }
 0x323   : > { %2085 = vpow2.f32 %v1111_v24 }
 0x324   : > { %2087 = vpow2.f32 %v1127_v25  ;;  %v991_v25 = vpop.f32.mrf.mxu0 }
 0x325   : > { %2089 = vpow2.f32 %v1113_v28 }
 0x326   : > { %2091 = vpow2.f32 %v1115_v31  ;;  %v1850_v27 = vpop.f32.mrf.mxu0 }
 0x327   : > { %2093 = vpow2.f32 %v1117_v32 }
 0x328   : > { %2095 = vpow2.f32 %v1125_v34  ;;  %v1001_v29 = vpop.f32.mrf.mxu0 }
 0x329   : > { %v2783_v37 = vpop.eup %2071  ;;  %2097 = vpow2.f32 %v1119_v36 }
 0x32a   : > { %1869 = vmatprep.subr.mxu1 %v2783_v37  ;;  %v2074_v40 = vpop.eup %2073  ;;  %2099 = vpow2.f32 %v1123_v35  ;;  %v1853_v30 = vpop.f32.mrf.mxu0 }
 0x32b   : > { %1870 = vmatpush3.msra.mxu1 %v2783_v37  ;;  %v2076_v41 = vpop.eup %2075  ;;  %2101 = vpow2.f32 %v1121_v38 }
 0x32c   : > { %1871 = vmatprep.subr.mxu1 %v2074_v40  ;;  %v2078_v39 = vpop.eup %2077  ;;  %v1011_v31 = vpop.f32.mrf.mxu0 }
 0x32d   : > { %1872 = vmatpush3.msra.mxu1 %v2074_v40  ;;  %v2080_v42 = vpop.eup %2079 }
 0x32e   : > { %1873 = vmatprep.subr.mxu1 %v2076_v41  ;;  %v2082_v43 = vpop.eup %2081  ;;  %v1856_v32 = vpop.f32.mrf.mxu0 }
 0x32f   : > { %1874 = vmatpush3.msra.mxu1 %v2076_v41  ;;  %v2084_v44 = vpop.eup %2083  ;;  %v1139_v45 = vadd.f32 %v2082_v43, %v2080_v42 }
 0x330   : > { %1875 = vmatprep.subr.mxu1 %v2078_v39  ;;  %v2086_v46 = vpop.eup %2085  ;;  %v1021_v36 = vpop.f32.mrf.mxu0 }
 0x331   : > { %1876 = vmatpush3.msra.mxu1 %v2078_v39  ;;  %v2088_v47 = vpop.eup %2087  ;;  %v1140_v48 = vadd.f32 %v2086_v46, %v1139_v45 }
 0x332   : > { %1877 = vmatprep.subr.mxu1 %v2084_v44  ;;  %v2090_v49 = vpop.eup %2089 }
 0x333   : > { %1878 = vmatpush3.msra.mxu1 %v2084_v44  ;;  %v1141_v50 = vadd.f32 %v2090_v49, %v1140_v48  ;;  %v2092_v51 = vpop.eup %2091 }
 0x334   : > { %1879 = vmatprep.subr.mxu1 %v2088_v47  ;;  %v2094_v52 = vpop.eup %2093 }
 0x335   : > { %1880 = vmatpush3.msra.mxu1 %v2088_v47  ;;  %v1142_v53 = vadd.f32 %v2092_v51, %v1141_v50  ;;  %v2096_v54 = vpop.eup %2095 }
 0x336   : > { %v2098_v55 = vpop.eup %2097  ;;  %1881 = vmatprep.subr.mxu1 %v2096_v54 }
 0x337   : > { %v1143_v56 = vadd.f32 %v2094_v52, %v1142_v53  ;;  %v2100_v57 = vpop.eup %2099  ;;  %1882 = vmatpush3.msra.mxu1 %v2096_v54 }
 0x338   : > { %1883 = vmatprep.subr.mxu1 %v2100_v57  ;;  %v2102_v59 = vpop.eup %2101 }
 0x339   : > { %v1144_v58 = vadd.f32 %v2098_v55, %v1143_v56  ;;  %1884 = vmatpush3.msra.mxu1 %v2100_v57 }
 0x33a   : > { %1885 = vmatprep.subr.mxu1 %v2102_v59 }
 0x33b   : > { %v1145_v60 = vadd.f32 %v2102_v59, %v1144_v58  ;;  %1886 = vmatpush3.msra.mxu1 %v2102_v59 }
 0x33c   : > { %1887 = vmatprep.subr.mxu1 %v2098_v55 }
 0x33d   : > { %v1146_v61 = vadd.f32 %v2100_v57, %v1145_v60  ;;  %1888 = vmatpush3.msra.mxu1 %v2098_v55 }
 0x33e   : > { %1889 = vmatprep.subr.mxu1 %v2094_v52 }
 0x33f   : > { %v1147_v62 = vadd.f32 %v2096_v54, %v1146_v61  ;;  %1890 = vmatpush3.msra.mxu1 %v2094_v52 }
 0x340   : > { %1891 = vmatprep.subr.mxu1 %v2092_v51 }
 0x341   : > { %v1148_v63 = vadd.f32 %v2088_v47, %v1147_v62  ;;  %1892 = vmatpush3.msra.mxu1 %v2092_v51 }
 0x342   : > { %1893 = vmatprep.subr.mxu1 %v2090_v49 }
 0x343   : > { %v1149_v0 = vadd.f32 %v2084_v44, %v1148_v63  ;;  %1894 = vmatpush3.msra.mxu1 %v2090_v49 }
 0x344   : > { %1895 = vmatprep.subr.mxu1 %v2086_v46 }
 0x345   : > { %v1150_v1 = vadd.f32 %v2078_v39, %v1149_v0  ;;  %1896 = vmatpush3.msra.mxu1 %v2086_v46  ;;  %v1859_v39 = vpop.f32.mrf.mxu0 }
 0x346   : > { %1897 = vmatprep.subr.mxu1 %v2082_v43 }
 0x347   : > { %v1151_v3 = vadd.f32 %v2076_v41, %v1150_v1  ;;  %1898 = vmatpush3.msra.mxu1 %v2082_v43  ;;  %v1031_v48 = vpop.f32.mrf.mxu0 }
 0x348   : > { %1899 = vmatprep.subr.mxu1 %v2080_v42 }
 0x349   : > { %v1152_v5 = vadd.f32 %v2074_v40, %v1151_v3  ;;  %1900 = vmatpush3.msra.mxu1 %v2080_v42  ;;  %v1862_v55 = vpop.f32.mrf.mxu0 }
 0x34a   : > { %1902 = vmatmul.mubr.f32.vlgmr.msra.gmra.mxu1 %v830_v4 }
 0x34b   : > { %v1153_v2 = vadd.f32 %v2783_v37, %v1152_v5  ;;  %1904 = vmatprep.mubr.f32.mxu1 %v831_v6  ;;  %v1041_v62 = vpop.f32.mrf.mxu0 }
 0x34d   : > { %v1154_v20 = vrot.slane %v1153_v2, 4  ;;  %v1865_v6 = vpop.f32.mrf.mxu0 }
 0x34e   : > { %1905 = vmatmul.mubr.f32.gmra.mxu1 %v832_v7 }
 0x34f   : > { %1907 = vmatprep.mubr.f32.mxu1 %v833_v8  ;;  %v1155_v21 = vadd.f32 %v1154_v20, %v1153_v2 }
 0x351   : > { %v1156_v22 = vrot.slane %v1155_v21, 2 }
 0x352   : > { %1908 = vmatmul.mubr.f32.gmra.mxu1 %v834_v9 }
 0x353   : > { %1910 = vmatprep.mubr.f32.mxu1 %v835_v10  ;;  %v1157_v24 = vadd.f32 %v1156_v22, %v1155_v21 }
 0x355   : > { %v1158_v26 = vrot.slane %v1157_v24, 1 }
 0x356   : > { %1911 = vmatmul.mubr.f32.gmra.mxu1 %v836_v11 }
 0x357   : > { %1913 = vmatprep.mubr.f32.mxu1 %v837_v12  ;;  %v1159_v28 = vadd.f32 %v1158_v26, %v1157_v24  ;;  %v1051_v12 = vpop.f32.mrf.mxu0 }
 0x359   : > { %2103 = vrcp.f32 %v1159_v28 }
 0x35a   : > { %1914 = vmatmul.mubr.f32.gmra.mxu1 %v838_v13 }
 0x35b   : > { %1916 = vmatprep.mubr.f32.mxu1 %v839_v14 }
 0x35e   : > { %1917 = vmatmul.mubr.f32.gmra.mxu1 %v840_v15 }
 0x35f   : > { %1919 = vmatprep.mubr.f32.mxu1 %v841_v16 }
 0x362   : > { %1920 = vmatmul.mubr.f32.gmra.mxu1 %v842_v17 }
 0x363   : > { %1922 = vmatprep.mubr.f32.mxu1 %v843_v18  ;;  %v1868_v18 = vpop.f32.mrf.mxu0 }
 0x366   : > { %1923 = vmatmul.mubr.f32.gmra.mxu1 %v844_v19  ;;  %v2788_v33 = vpop.eup %2103 }
 0x40a   : > { %v1903_v34 = vpop.f32.mrf.mxu1 }
 0x40b   : > { %v1307_v35 = vmul.f32 %v2788_v33, %v1903_v34 }
 0x40c   : > { %v1226_v37 = vpop.f32.mrf.mxu1 }
 0x40d   : > { %v1323_v38 = vadd.f32 %v1847_v23, %v1307_v35  ;;  %v1306_v40 = vmul.f32 %v2788_v33, %v1226_v37 }
 0x40e   : > { %v1906_v41 = vpop.f32.mrf.mxu1 }
 0x40f   : > { %1339 = vst [vmem:[%s2657_s6 + $0x8] sm:$0xff] %v1323_v38  ;;  %v1322_v42 = vadd.f32 %v1306_v40, %v991_v25  ;;  %v1309_v43 = vmul.f32 %v2788_v33, %v1906_v41  ;;  %v1061_v25 = vpop.f32.mrf.mxu0 }
 0x410   : > { %v1236_v44 = vpop.f32.mrf.mxu1 }
 0x411   : > { %1338 = vst [vmem:[%s2657_s6] sm:$0xff] %v1322_v42  ;;  %v1325_v45 = vadd.f32 %v1850_v27, %v1309_v43  ;;  %v1308_v46 = vmul.f32 %v2788_v33, %v1236_v44 }
 0x412   : > { %v1909_v47 = vpop.f32.mrf.mxu1 }
 0x413   : > { %1341 = vst [vmem:[%s2657_s6 + $0x18] sm:$0xff] %v1325_v45  ;;  %v1324_v49 = vadd.f32 %v1308_v46, %v1001_v29  ;;  %v1311_v50 = vmul.f32 %v2788_v33, %v1909_v47 }
 0x414   : > { %v1246_v51 = vpop.f32.mrf.mxu1 }
 0x415   : > { %1340 = vst [vmem:[%s2657_s6 + $0x10] sm:$0xff] %v1324_v49  ;;  %v1327_v52 = vadd.f32 %v1853_v30, %v1311_v50  ;;  %v1310_v53 = vmul.f32 %v2788_v33, %v1246_v51 }
 0x416   : > { %v1912_v54 = vpop.f32.mrf.mxu1 }
 0x417   : > { %1343 = vst [vmem:[%s2657_s6 + $0x28] sm:$0xff] %v1327_v52  ;;  %v1326_v56 = vadd.f32 %v1310_v53, %v1011_v31  ;;  %v1313_v57 = vmul.f32 %v2788_v33, %v1912_v54 }
 0x418   : > { %v1256_v58 = vpop.f32.mrf.mxu1 }
 0x419   : > { %1342 = vst [vmem:[%s2657_s6 + $0x20] sm:$0xff] %v1326_v56  ;;  %v1329_v59 = vadd.f32 %v1856_v32, %v1313_v57  ;;  %v1312_v60 = vmul.f32 %v2788_v33, %v1256_v58 }
 0x41a   : > { %v1915_v61 = vpop.f32.mrf.mxu1 }
 0x41b   : > { %1345 = vst [vmem:[%s2657_s6 + $0x38] sm:$0xff] %v1329_v59  ;;  %v1328_v63 = vadd.f32 %v1312_v60, %v1021_v36  ;;  %v1315_v0 = vmul.f32 %v2788_v33, %v1915_v61 }
 0x41c   : > { %v1266_v1 = vpop.f32.mrf.mxu1 }
 0x41d   : > { %1344 = vst [vmem:[%s2657_s6 + $0x30] sm:$0xff] %v1328_v63  ;;  %v1331_v3 = vadd.f32 %v1859_v39, %v1315_v0  ;;  %v1314_v4 = vmul.f32 %v2788_v33, %v1266_v1 }
 0x41e   : > { %v1918_v5 = vpop.f32.mrf.mxu1 }
 0x41f   : > { %1347 = vst [vmem:[%s2657_s6 + $0x48] sm:$0xff] %v1331_v3  ;;  %v1330_v2 = vadd.f32 %v1314_v4, %v1031_v48  ;;  %v1317_v7 = vmul.f32 %v2788_v33, %v1918_v5 }
 0x420   : > { %v1276_v8 = vpop.f32.mrf.mxu1 }
 0x421   : > { %1346 = vst [vmem:[%s2657_s6 + $0x40] sm:$0xff] %v1330_v2  ;;  %v1333_v9 = vadd.f32 %v1862_v55, %v1317_v7  ;;  %v1316_v10 = vmul.f32 %v2788_v33, %v1276_v8 }
 0x422   : > { %v1921_v11 = vpop.f32.mrf.mxu1 }
 0x423   : > { %1349 = vst [vmem:[%s2657_s6 + $0x58] sm:$0xff] %v1333_v9  ;;  %v1332_v13 = vadd.f32 %v1316_v10, %v1041_v62  ;;  %v1319_v14 = vmul.f32 %v2788_v33, %v1921_v11 }
 0x424   : > { %v1286_v15 = vpop.f32.mrf.mxu1 }
 0x425   : > { %1348 = vst [vmem:[%s2657_s6 + $0x50] sm:$0xff] %v1332_v13  ;;  %v1335_v16 = vadd.f32 %v1865_v6, %v1319_v14  ;;  %v1318_v17 = vmul.f32 %v2788_v33, %v1286_v15 }
 0x426   : > { %v1924_v19 = vpop.f32.mrf.mxu1 }
 0x427   : > { %1351 = vst [vmem:[%s2657_s6 + $0x68] sm:$0xff] %v1335_v16  ;;  %v1334_v20 = vadd.f32 %v1318_v17, %v1051_v12  ;;  %v1321_v21 = vmul.f32 %v2788_v33, %v1924_v19 }
 0x428   : > { %v1296_v22 = vpop.f32.mrf.mxu1 }
 0x429   : > { %1350 = vst [vmem:[%s2657_s6 + $0x60] sm:$0xff] %v1334_v20  ;;  %v1337_v23 = vadd.f32 %v1868_v18, %v1321_v21  ;;  %v1320_v24 = vmul.f32 %v2788_v33, %v1296_v22 }
 0x42b   : > { %1353 = vst [vmem:[%s2657_s6 + $0x78] sm:$0xff] %v1337_v23  ;;  %v1336_v26 = vadd.f32 %v1320_v24, %v1061_v25 }
 0x42d   : > { %1352 = vst [vmem:[%s2657_s6 + $0x70] sm:$0xff] %v1336_v26 }
 0x42e   : > { %2252 = shalt.err (!%p2249_p8)
}
 0x42f   : > { %s2253_s12 = scalar_lea.hbm %s2829_s8, 2048  ;;  %s2257_s6 = scalar_lea.hbm %s2945_s14, 12288 }
 0x430   : > { %p2254_p1 = scmp.ne.s32.totalorder %s2829_s8, %s2253_s12  ;;  %p2258_p4 = scmp.lt.s32.totalorder %s2829_s8, %s2945_s14 }
 0x431   : > { %p2259_p0 = scmp.lt.s32.totalorder %s2257_s6, %s2253_s12 }
 0x432   : > { %p2255_p10 = pnand %p2254_p1, %p2555_p5 }
 0x433   : > { %p2260_p3 = por %p2259_p0, %p2258_p4 }
 0x434   : > { %p2256_p13 = pneg %p2255_p10 }
 0x436   : > { %p2261_p6 = pnand %p2260_p3, %p2256_p13 }
 0x438   : > { %2264 = shalt.err (!%p2261_p6)
}
 0x439   : > { %s2382_s25 = smov 128   ;;  %s2383_s5 = smov 384  }
 0x43a   : > { %s2384_s24 = smov 8  }
 0x43b   : > { %1943 = dma.vmem_to_hbm [thread:$0]  (%p2555_p5), %s2823_s15, 2048, %s2829_s8, %s1355_s2, %s2382_s25, %s2383_s5, %s2384_s24  }
 0x43c PF: > { %s2946_s16 = sld [smem:[#allocation19_spill]]  ;;  %p1973_p2 = scmp.ge.s32.totalorder %s2371_s28, 2 }
 0x43d   : > { %s2947_s30 = sld [smem:[#allocation21_spill]] }
 0x442   : > { %s1384_s21 = sand.u32 1, %s2946_s16  }
 0x443   : > { %p2948_p9 = scmp.ne.s32.totalorder %s2947_s30, 0  ;;  %s1385_s9 = scalar_lea.sflag [#allocation6], %s1384_s21 }
 0x445   : > { %p1963_p12 = pnand %p1973_p2, %p2948_p9 }
 0x447   : > { %p1964_p7 = pneg %p1963_p12 }
 0x449   : > { %2326 = dma.done.wait (%p1964_p7), %s1385_s9, 2048  }
 0x44a   : > { %2328 = vsyncadd (%p1964_p7), %s1385_s9, 4294965248  ;;  %s25_s28 = sadd.s32 1, %s2371_s28   ;;  %s2949_s13 = sld [smem:[#allocation22_spill]] }
 0x44b   : > { %p22_p11 = scmp.ge.s32.totalorder %s25_s28, 8   ;;  %s2950_s10 = sld [smem:[#allocation24_spill]] }
 0x44c   : > { %s2951_s18 = smov %s2335_s19  ;;  %s2952_s19 = smov %s2339_s20 }
 0x44d   : > { %s2953_s20 = smov %s2604_s11  ;;  %s2954_s21 = smov %s2347_s22 }
 0x44e   : > { %s2955_s22 = smov %s2351_s23  ;;  %s2956_s23 = smov %s2578_s3 }
 0x44f   : > { %s2957_s24 = smov %s2363_s26  ;;  %s2958_s25 = smov %s2367_s27 }
 0x450   : > { %s2959_s26 = smov %s2949_s13  ;;  %24 = sbr.rel (!%p22_p11) target bundleno = 17 (0x11), region = 114 }
 0x451   : > { %s2960_s27 = smov %s2950_s10 }
 0x455   :  { %1390 = vsyncpa [#allocation5], 1 }
 0x456   :  { %1392 = vsyncpa [#allocation5 + $0x1], 1 }
 0x457   :  { %1393 = vsyncpa [#allocation8], 1 }
 0x458   :  { %1395 = vsyncpa [#allocation8 + $0x1], 1 }
 0x459   :  { %1396 = vsyncpa [#allocation11], 1 }
 0x45a   :  { %1397 = vsyncpa [#allocation6], 1 }
 0x45b   :  { %1399 = vsyncpa [#allocation6 + $0x1], 1 }

</bundles_post_ra>
